<compile_context>
chip_gen: v6e
topology: v6e:2x2x1
jax: 0.10.0
libtpu: 0.0.40
codegen_flags: <defaults>
</compile_context>

<pallas_src>
import functools

import jax
import jax.numpy as jnp
from jax.experimental import pallas as pl
from jax.experimental.pallas import tpu as pltpu


# ---------------------------------------------------------------------------
# Shared in-kernel shifted-window conv for one image: returns (cout, L) f32.
#   xf_ref:   (1, cin, Lf)     height-padded, row-flattened input (+pad zeros both ends)
#   w_ref:    (k*k, cout, cin) weights, tap-major
#   mask_ref: (k, L)           horizontal-validity mask per kernel column j
#   b_ref:    (cout, 1)        conv bias (f32)
# ---------------------------------------------------------------------------
def _conv_tile(xf_ref, w_ref, mask_ref, b_ref, *, k, pad, width, l_out, cout):
    acc = jnp.zeros((cout, l_out), jnp.float32)
    for j in range(k):
        # Mask lanes whose flat shift wrapped into the neighbouring row (column j != pad).
        mask = mask_ref[j:j + 1, :] if j != pad else None          # (1, L)
        for i in range(k):
            start = i * width + j                                  # static flat shift
            patch = xf_ref[0, :, start:start + l_out]              # (cin, L)
            if mask is not None:
                patch = patch * mask
            acc = acc + jnp.dot(w_ref[i * k + j], patch,
                                preferred_element_type=jnp.float32)
    return acc + b_ref[...]                                        # (cout,L) + (cout,1)


# ---------------------------------------------------------------------------
# Pass 1: conv (kept in VMEM only) -> per-image partial BN statistics.
# Emits (sum, sum of squared deviations about the per-image mean) per channel.
# ---------------------------------------------------------------------------
def _conv_stats_kernel(xf_ref, w_ref, mask_ref, b_ref, psum_ref, pm2_ref,
                       *, conv_fn, l_out):
    conv = conv_fn(xf_ref, w_ref, mask_ref, b_ref)                 # (cout, L) f32
    s = jnp.sum(conv, axis=1, keepdims=True)                       # (cout, 1)
    mu = s * (1.0 / l_out)
    d = conv - mu
    psum_ref[0] = s
    pm2_ref[0] = jnp.sum(d * d, axis=1, keepdims=True)


# ---------------------------------------------------------------------------
# Pass 2: recompute conv, apply folded BN (y*scale + shift) + ELU, write NCHW-flat.
# ---------------------------------------------------------------------------
def _conv_bn_elu_kernel(xf_ref, w_ref, mask_ref, b_ref, scale_ref, shift_ref, out_ref,
                        *, conv_fn, with_relu):
    conv = conv_fn(xf_ref, w_ref, mask_ref, b_ref)                 # (cout, L) f32
    y = conv * scale_ref[...] + shift_ref[...]
    if with_relu:
        # ELU(alpha=1): y if y > 0 else exp(y) - 1   (clamp exp arg for safety)
        y = jnp.where(y > 0.0, y, jnp.exp(jnp.minimum(y, 0.0)) - 1.0)
    out_ref[0] = y


# ---------------------------------------------------------------------------
# Wrapper: layout prep (cheap XLA on the raw input), two pallas_calls, stats merge.
# ---------------------------------------------------------------------------
def conv_block_forward(x, weight, bias, gamma, beta, *, stride=1, padding=0,
                       eps=1e-5, with_bn=True, with_relu=True, use_bf16_matmul=True):
    n, cin, h, w_img = x.shape
    cout, cin_w, kh, kw = weight.shape
    assert cin_w == cin and kh == kw, "square kernels only"
    k = kh
    assert stride == 1 and 2 * padding == k - 1, (
        "kernel implements stride=1 with 2*padding == kernel_size-1 (same-geometry)")
    pad = padding
    ho, wo = h, w_img
    l_out = ho * wo

    mm_dtype = jnp.bfloat16 if use_bf16_matmul else jnp.float32

    # Height-pad, flatten rows, then pad the flat axis by `pad` on each end so every
    # tap's shifted slice [i*W + j : i*W + j + L] stays in bounds.  Only the raw input
    # is touched (no k*k inflation); the bf16 cast halves the dominant read stream.
    xf = jnp.pad(x, ((0, 0), (0, 0), (pad, pad), (0, 0)))
    xf = xf.reshape(n, cin, (h + 2 * pad) * w_img)
    xf = jnp.pad(xf, ((0, 0), (0, 0), (pad, pad))).astype(mm_dtype)
    lf = xf.shape[-1]

    # Weights tap-major: w_taps[i*k + j] = weight[:, :, i, j] -> (k*k, cout, cin).
    w_taps = jnp.transpose(weight, (2, 3, 0, 1)).reshape(k * k, cout, cin).astype(mm_dtype)

    # Per-column horizontal-validity masks (zero lanes whose flat shift wrapped rows).
    col = jnp.arange(l_out, dtype=jnp.int32) % wo
    masks = jnp.stack(
        [((col + (j - pad) >= 0) & (col + (j - pad) < w_img)).astype(mm_dtype)
         for j in range(k)], axis=0)                                # (k, L)

    bias_col = bias.reshape(cout, 1).astype(jnp.float32)

    conv_fn = functools.partial(_conv_tile, k=k, pad=pad, width=w_img,
                                l_out=l_out, cout=cout)

    grid = (n,)
    parallel = pltpu.CompilerParams(dimension_semantics=("parallel",))

    xf_spec = pl.BlockSpec((1, cin, lf), lambda i: (i, 0, 0))
    w_spec = pl.BlockSpec((k * k, cout, cin), lambda i: (0, 0, 0))
    m_spec = pl.BlockSpec((k, l_out), lambda i: (0, 0))
    col_spec = pl.BlockSpec((cout, 1), lambda i: (0, 0))            # bias / scale / shift

    if with_bn:
        psum, pm2 = pl.pallas_call(
            functools.partial(_conv_stats_kernel, conv_fn=conv_fn, l_out=l_out),
            out_shape=(jax.ShapeDtypeStruct((n, cout, 1), jnp.float32),
                       jax.ShapeDtypeStruct((n, cout, 1), jnp.float32)),
            grid_spec=pltpu.PrefetchScalarGridSpec(
                num_scalar_prefetch=0, grid=grid,
                in_specs=[xf_spec, w_spec, m_spec, col_spec],
                out_specs=[pl.BlockSpec((1, cout, 1), lambda i: (i, 0, 0)),
                           pl.BlockSpec((1, cout, 1), lambda i: (i, 0, 0))]),
            compiler_params=parallel,
        )(xf, w_taps, masks, bias_col)

        # Chan-style merge of per-image partials -> batch mean / biased var (training BN).
        count = n * l_out
        mean = jnp.sum(psum, axis=0) / count                        # (cout, 1)
        mu_b = psum / l_out                                         # (n, cout, 1)
        m2 = jnp.sum(pm2, axis=0) + l_out * jnp.sum((mu_b - mean[None]) ** 2, axis=0)
        var = m2 / count
        scale = gamma.reshape(cout, 1) * jax.lax.rsqrt(var + eps)
        shift = beta.reshape(cout, 1) - mean * scale
    else:
        scale = jnp.ones((cout, 1), jnp.float32)
        shift = jnp.zeros((cout, 1), jnp.float32)

    out_flat = pl.pallas_call(
        functools.partial(_conv_bn_elu_kernel, conv_fn=conv_fn, with_relu=with_relu),
        out_shape=jax.ShapeDtypeStruct((n, cout, l_out), jnp.float32),
        grid_spec=pltpu.PrefetchScalarGridSpec(
            num_scalar_prefetch=0, grid=grid,
            in_specs=[xf_spec, w_spec, m_spec, col_spec, col_spec, col_spec],
            out_specs=pl.BlockSpec((1, cout, l_out), lambda i: (i, 0, 0))),
        compiler_params=parallel,
    )(xf, w_taps, masks, bias_col,
      scale.astype(jnp.float32), shift.astype(jnp.float32))

    # (N, Cout, Ho*Wo) -> (N, Cout, Ho, Wo): free reshape, no transpose, no copy.
    return out_flat.reshape(n, cout, ho, wo)


# ---------------------------------------------------------------------------
# Pure-JAX reference (matches PyTorch ConvBlock forward: Conv2d(+bias) ->
# BatchNorm2d in training mode -> ELU(alpha=1)).
# TODO(synk): BatchNorm2d's running_mean/running_var buffer updates are training-side
# state and are not emitted (they do not affect the forward output).
# ---------------------------------------------------------------------------
def _reference(x, weight, bias, gamma, beta, *, stride, padding, eps=1e-5):
    conv = jax.lax.conv_general_dilated(
        x, weight, (stride, stride), [(padding, padding), (padding, padding)],
        dimension_numbers=("NCHW", "OIHW", "NCHW"))
    conv = conv + bias.reshape(1, -1, 1, 1)
    mean = conv.mean(axis=(0, 2, 3), keepdims=True)
    var = conv.var(axis=(0, 2, 3), keepdims=True)        # biased (training-mode BN)
    y = (conv - mean) / jnp.sqrt(var + eps)
    y = y * gamma.reshape(1, -1, 1, 1) + beta.reshape(1, -1, 1, 1)
    return jax.nn.elu(y)


if __name__ == "__main__":
    key = jax.random.PRNGKey(0)
    kx, kwt, kb, kg, kbe = jax.random.split(key, 5)

    # ConvBlock(in_channels=4, out_channels=8, kernel_size=3, stride=1, padding=1)
    N, Cin, H, W = 2, 4, 16, 16
    Cout, ksz, stride, padding = 8, 3, 1, 1

    x = jax.random.normal(kx, (N, Cin, H, W), dtype=jnp.float32)
    weight = jax.random.normal(kwt, (Cout, Cin, ksz, ksz), dtype=jnp.float32) * 0.1
    bias = jax.random.normal(kb, (Cout,), dtype=jnp.float32) * 0.1
    gamma = 1.0 + 0.1 * jax.random.normal(kg, (Cout,), dtype=jnp.float32)
    beta = 0.1 * jax.random.normal(kbe, (Cout,), dtype=jnp.float32)

    ref = _reference(x, weight, bias, gamma, beta, stride=stride, padding=padding)

    # f32 MXU path: tight check against the f32 reference.
    fwd_f32 = jax.jit(functools.partial(conv_block_forward, stride=stride,
                                        padding=padding, use_bf16_matmul=False))
    out_f32 = jax.block_until_ready(fwd_f32(x, weight, bias, gamma, beta))
    assert out_f32.shape == ref.shape == (N, Cout, H, W)
    assert jnp.allclose(out_f32, ref, atol=1e-4, rtol=1e-4), \
        float(jnp.abs(out_f32 - ref).max())

    # bf16 MXU path (performance default): looser tolerance for bf16 input rounding.
    fwd_bf16 = jax.jit(functools.partial(conv_block_forward, stride=stride,
                                         padding=padding, use_bf16_matmul=True))
    out_bf16 = jax.block_until_ready(fwd_bf16(x, weight, bias, gamma, beta))
    assert jnp.allclose(out_bf16, ref, atol=5e-2, rtol=5e-2), \
        float(jnp.abs(out_bf16 - ref).max())

    print("KERNEL_OK")
</pallas_src>

<mosaic_0001>
module attributes {stable_mosaic.version = 11 : i64} {
  func.func @_conv_stats_kernel(%arg0: i32, %arg1: memref<1x4x290xf32, #tpu.memory_space<vmem>>, %arg2: memref<9x8x4xf32, #tpu.memory_space<vmem>>, %arg3: memref<3x256xf32, #tpu.memory_space<vmem>>, %arg4: memref<8x1xf32, #tpu.memory_space<vmem>>, %arg5: memref<1x8x1xf32, #tpu.memory_space<vmem>>, %arg6: memref<1x8x1xf32, #tpu.memory_space<vmem>>) attributes {dimension_semantics = [#tpu.dimension_semantics<parallel>], iteration_bounds = array<i64: 2>, scalar_prefetch = 0 : i64, scratch_operands = 0 : i64, tpu.core_type = #tpu.core_type<tc>, window_params = [{transform_indices = @transform_0, window_bounds = array<i64: 1, 4, 290>}, {pipeline_mode = #tpu.pipeline_mode<synchronous>, transform_indices = @transform_1, window_bounds = array<i64: 9, 8, 4>}, {pipeline_mode = #tpu.pipeline_mode<synchronous>, transform_indices = @transform_2, window_bounds = array<i64: 3, 256>}, {pipeline_mode = #tpu.pipeline_mode<synchronous>, transform_indices = @transform_3, window_bounds = array<i64: 8, 1>}, {transform_indices = @transform_4, window_bounds = array<i64: 1, 8, 1>}, {transform_indices = @transform_5, window_bounds = array<i64: 1, 8, 1>}]} {
    %cst = arith.constant 0.000000e+00 : f32
    %0 = vector.broadcast %cst : f32 to vector<8x256xf32>
    %c0 = arith.constant 0 : index
    %c0_0 = arith.constant 0 : index
    %1 = vector.load %arg3[%c0, %c0_0] : memref<3x256xf32, #tpu.memory_space<vmem>>, vector<1x256xf32>
    %c0_1 = arith.constant 0 : index
    %c0_2 = arith.constant 0 : index
    %c0_3 = arith.constant 0 : index
    %2 = vector.load %arg1[%c0_1, %c0_2, %c0_3] : memref<1x4x290xf32, #tpu.memory_space<vmem>>, vector<1x4x256xf32>
    %3 = vector.shape_cast %2 : vector<1x4x256xf32> to vector<4x256xf32>
    %4 = vector.broadcast %1 : vector<1x256xf32> to vector<4x256xf32>
    %5 = arith.mulf %3, %4 : vector<4x256xf32>
    %c0_4 = arith.constant 0 : index
    %c0_5 = arith.constant 0 : index
    %c0_6 = arith.constant 0 : index
    %6 = vector.load %arg2[%c0_4, %c0_5, %c0_6] : memref<9x8x4xf32, #tpu.memory_space<vmem>>, vector<1x8x4xf32>
    %7 = vector.shape_cast %6 : vector<1x8x4xf32> to vector<8x4xf32>
    %cst_7 = arith.constant dense<0.000000e+00> : vector<8x256xf32>
    %8 = tpu.matmul %7, %5, %cst_7 {dimension_numbers = #tpu.dot_dimension_numbers<[1], [0], [0], [1], [0, 0, 1, 1], [], []>} : vector<8x4xf32>, vector<4x256xf32>, vector<8x256xf32> -> vector<8x256xf32>
    %9 = arith.addf %0, %8 : vector<8x256xf32>
    %c0_8 = arith.constant 0 : index
    %c0_9 = arith.constant 0 : index
    %c16 = arith.constant 16 : index
    %10 = vector.load %arg1[%c0_8, %c0_9, %c16] : memref<1x4x290xf32, #tpu.memory_space<vmem>>, vector<1x4x256xf32>
    %11 = vector.shape_cast %10 : vector<1x4x256xf32> to vector<4x256xf32>
    %12 = vector.broadcast %1 : vector<1x256xf32> to vector<4x256xf32>
    %13 = arith.mulf %11, %12 : vector<4x256xf32>
    %c3 = arith.constant 3 : index
    %c0_10 = arith.constant 0 : index
    %c0_11 = arith.constant 0 : index
    %14 = vector.load %arg2[%c3, %c0_10, %c0_11] : memref<9x8x4xf32, #tpu.memory_space<vmem>>, vector<1x8x4xf32>
    %15 = vector.shape_cast %14 : vector<1x8x4xf32> to vector<8x4xf32>
    %cst_12 = arith.constant dense<0.000000e+00> : vector<8x256xf32>
    %16 = tpu.matmul %15, %13, %cst_12 {dimension_numbers = #tpu.dot_dimension_numbers<[1], [0], [0], [1], [0, 0, 1, 1], [], []>} : vector<8x4xf32>, vector<4x256xf32>, vector<8x256xf32> -> vector<8x256xf32>
    %17 = arith.addf %9, %16 : vector<8x256xf32>
    %c0_13 = arith.constant 0 : index
    %c0_14 = arith.constant 0 : index
    %c32 = arith.constant 32 : index
    %18 = vector.load %arg1[%c0_13, %c0_14, %c32] : memref<1x4x290xf32, #tpu.memory_space<vmem>>, vector<1x4x256xf32>
    %19 = vector.shape_cast %18 : vector<1x4x256xf32> to vector<4x256xf32>
    %20 = vector.broadcast %1 : vector<1x256xf32> to vector<4x256xf32>
    %21 = arith.mulf %19, %20 : vector<4x256xf32>
    %c6 = arith.constant 6 : index
    %c0_15 = arith.constant 0 : index
    %c0_16 = arith.constant 0 : index
    %22 = vector.load %arg2[%c6, %c0_15, %c0_16] : memref<9x8x4xf32, #tpu.memory_space<vmem>>, vector<1x8x4xf32>
    %23 = vector.shape_cast %22 : vector<1x8x4xf32> to vector<8x4xf32>
    %cst_17 = arith.constant dense<0.000000e+00> : vector<8x256xf32>
    %24 = tpu.matmul %23, %21, %cst_17 {dimension_numbers = #tpu.dot_dimension_numbers<[1], [0], [0], [1], [0, 0, 1, 1], [], []>} : vector<8x4xf32>, vector<4x256xf32>, vector<8x256xf32> -> vector<8x256xf32>
    %25 = arith.addf %17, %24 : vector<8x256xf32>
    %c0_18 = arith.constant 0 : index
    %c0_19 = arith.constant 0 : index
    %c1 = arith.constant 1 : index
    %26 = vector.load %arg1[%c0_18, %c0_19, %c1] : memref<1x4x290xf32, #tpu.memory_space<vmem>>, vector<1x4x256xf32>
    %27 = vector.shape_cast %26 : vector<1x4x256xf32> to vector<4x256xf32>
    %c1_20 = arith.constant 1 : index
    %c0_21 = arith.constant 0 : index
    %c0_22 = arith.constant 0 : index
    %28 = vector.load %arg2[%c1_20, %c0_21, %c0_22] : memref<9x8x4xf32, #tpu.memory_space<vmem>>, vector<1x8x4xf32>
    %29 = vector.shape_cast %28 : vector<1x8x4xf32> to vector<8x4xf32>
    %cst_23 = arith.constant dense<0.000000e+00> : vector<8x256xf32>
    %30 = tpu.matmul %29, %27, %cst_23 {dimension_numbers = #tpu.dot_dimension_numbers<[1], [0], [0], [1], [0, 0, 1, 1], [], []>} : vector<8x4xf32>, vector<4x256xf32>, vector<8x256xf32> -> vector<8x256xf32>
    %31 = arith.addf %25, %30 : vector<8x256xf32>
    %c0_24 = arith.constant 0 : index
    %c0_25 = arith.constant 0 : index
    %c17 = arith.constant 17 : index
    %32 = vector.load %arg1[%c0_24, %c0_25, %c17] : memref<1x4x290xf32, #tpu.memory_space<vmem>>, vector<1x4x256xf32>
    %33 = vector.shape_cast %32 : vector<1x4x256xf32> to vector<4x256xf32>
    %c4 = arith.constant 4 : index
    %c0_26 = arith.constant 0 : index
    %c0_27 = arith.constant 0 : index
    %34 = vector.load %arg2[%c4, %c0_26, %c0_27] : memref<9x8x4xf32, #tpu.memory_space<vmem>>, vector<1x8x4xf32>
    %35 = vector.shape_cast %34 : vector<1x8x4xf32> to vector<8x4xf32>
    %cst_28 = arith.constant dense<0.000000e+00> : vector<8x256xf32>
    %36 = tpu.matmul %35, %33, %cst_28 {dimension_numbers = #tpu.dot_dimension_numbers<[1], [0], [0], [1], [0, 0, 1, 1], [], []>} : vector<8x4xf32>, vector<4x256xf32>, vector<8x256xf32> -> vector<8x256xf32>
    %37 = arith.addf %31, %36 : vector<8x256xf32>
    %c0_29 = arith.constant 0 : index
    %c0_30 = arith.constant 0 : index
    %c33 = arith.constant 33 : index
    %38 = vector.load %arg1[%c0_29, %c0_30, %c33] : memref<1x4x290xf32, #tpu.memory_space<vmem>>, vector<1x4x256xf32>
    %39 = vector.shape_cast %38 : vector<1x4x256xf32> to vector<4x256xf32>
    %c7 = arith.constant 7 : index
    %c0_31 = arith.constant 0 : index
    %c0_32 = arith.constant 0 : index
    %40 = vector.load %arg2[%c7, %c0_31, %c0_32] : memref<9x8x4xf32, #tpu.memory_space<vmem>>, vector<1x8x4xf32>
    %41 = vector.shape_cast %40 : vector<1x8x4xf32> to vector<8x4xf32>
    %cst_33 = arith.constant dense<0.000000e+00> : vector<8x256xf32>
    %42 = tpu.matmul %41, %39, %cst_33 {dimension_numbers = #tpu.dot_dimension_numbers<[1], [0], [0], [1], [0, 0, 1, 1], [], []>} : vector<8x4xf32>, vector<4x256xf32>, vector<8x256xf32> -> vector<8x256xf32>
    %43 = arith.addf %37, %42 : vector<8x256xf32>
    %c2 = arith.constant 2 : index
    %c0_34 = arith.constant 0 : index
    %44 = vector.load %arg3[%c2, %c0_34] : memref<3x256xf32, #tpu.memory_space<vmem>>, vector<1x256xf32>
    %c0_35 = arith.constant 0 : index
    %c0_36 = arith.constant 0 : index
    %c2_37 = arith.constant 2 : index
    %45 = vector.load %arg1[%c0_35, %c0_36, %c2_37] : memref<1x4x290xf32, #tpu.memory_space<vmem>>, vector<1x4x256xf32>
    %46 = vector.shape_cast %45 : vector<1x4x256xf32> to vector<4x256xf32>
    %47 = vector.broadcast %44 : vector<1x256xf32> to vector<4x256xf32>
    %48 = arith.mulf %46, %47 : vector<4x256xf32>
    %c2_38 = arith.constant 2 : index
    %c0_39 = arith.constant 0 : index
    %c0_40 = arith.constant 0 : index
    %49 = vector.load %arg2[%c2_38, %c0_39, %c0_40] : memref<9x8x4xf32, #tpu.memory_space<vmem>>, vector<1x8x4xf32>
    %50 = vector.shape_cast %49 : vector<1x8x4xf32> to vector<8x4xf32>
    %cst_41 = arith.constant dense<0.000000e+00> : vector<8x256xf32>
    %51 = tpu.matmul %50, %48, %cst_41 {dimension_numbers = #tpu.dot_dimension_numbers<[1], [0], [0], [1], [0, 0, 1, 1], [], []>} : vector<8x4xf32>, vector<4x256xf32>, vector<8x256xf32> -> vector<8x256xf32>
    %52 = arith.addf %43, %51 : vector<8x256xf32>
    %c0_42 = arith.constant 0 : index
    %c0_43 = arith.constant 0 : index
    %c18 = arith.constant 18 : index
    %53 = vector.load %arg1[%c0_42, %c0_43, %c18] : memref<1x4x290xf32, #tpu.memory_space<vmem>>, vector<1x4x256xf32>
    %54 = vector.shape_cast %53 : vector<1x4x256xf32> to vector<4x256xf32>
    %55 = vector.broadcast %44 : vector<1x256xf32> to vector<4x256xf32>
    %56 = arith.mulf %54, %55 : vector<4x256xf32>
    %c5 = arith.constant 5 : index
    %c0_44 = arith.constant 0 : index
    %c0_45 = arith.constant 0 : index
    %57 = vector.load %arg2[%c5, %c0_44, %c0_45] : memref<9x8x4xf32, #tpu.memory_space<vmem>>, vector<1x8x4xf32>
    %58 = vector.shape_cast %57 : vector<1x8x4xf32> to vector<8x4xf32>
    %cst_46 = arith.constant dense<0.000000e+00> : vector<8x256xf32>
    %59 = tpu.matmul %58, %56, %cst_46 {dimension_numbers = #tpu.dot_dimension_numbers<[1], [0], [0], [1], [0, 0, 1, 1], [], []>} : vector<8x4xf32>, vector<4x256xf32>, vector<8x256xf32> -> vector<8x256xf32>
    %60 = arith.addf %52, %59 : vector<8x256xf32>
    %c0_47 = arith.constant 0 : index
    %c0_48 = arith.constant 0 : index
    %c34 = arith.constant 34 : index
    %61 = vector.load %arg1[%c0_47, %c0_48, %c34] : memref<1x4x290xf32, #tpu.memory_space<vmem>>, vector<1x4x256xf32>
    %62 = vector.shape_cast %61 : vector<1x4x256xf32> to vector<4x256xf32>
    %63 = vector.broadcast %44 : vector<1x256xf32> to vector<4x256xf32>
    %64 = arith.mulf %62, %63 : vector<4x256xf32>
    %c8 = arith.constant 8 : index
    %c0_49 = arith.constant 0 : index
    %c0_50 = arith.constant 0 : index
    %65 = vector.load %arg2[%c8, %c0_49, %c0_50] : memref<9x8x4xf32, #tpu.memory_space<vmem>>, vector<1x8x4xf32>
    %66 = vector.shape_cast %65 : vector<1x8x4xf32> to vector<8x4xf32>
    %cst_51 = arith.constant dense<0.000000e+00> : vector<8x256xf32>
    %67 = tpu.matmul %66, %64, %cst_51 {dimension_numbers = #tpu.dot_dimension_numbers<[1], [0], [0], [1], [0, 0, 1, 1], [], []>} : vector<8x4xf32>, vector<4x256xf32>, vector<8x256xf32> -> vector<8x256xf32>
    %68 = arith.addf %60, %67 : vector<8x256xf32>
    %c0_52 = arith.constant 0 : index
    %c0_53 = arith.constant 0 : index
    %69 = vector.load %arg4[%c0_52, %c0_53] : memref<8x1xf32, #tpu.memory_space<vmem>>, vector<8x1xf32>
    %70 = vector.broadcast %69 : vector<8x1xf32> to vector<8x256xf32>
    %71 = arith.addf %68, %70 : vector<8x256xf32>
    %cst_54 = arith.constant dense<0.000000e+00> : vector<8xf32>
    %72 = vector.multi_reduction <add>, %71, %cst_54 [1] : vector<8x256xf32> to vector<8xf32>
    %73 = vector.shape_cast %72 : vector<8xf32> to vector<8x1xf32>
    %cst_55 = arith.constant 3.906250e-03 : f32
    %74 = vector.broadcast %cst_55 : f32 to vector<8x1xf32>
    %75 = arith.mulf %73, %74 : vector<8x1xf32>
    %76 = vector.broadcast %75 : vector<8x1xf32> to vector<8x256xf32>
    %77 = arith.subf %71, %76 : vector<8x256xf32>
    %c0_56 = arith.constant 0 : index
    %c0_57 = arith.constant 0 : index
    %c0_58 = arith.constant 0 : index
    %78 = vector.load %arg5[%c0_56, %c0_57, %c0_58] : memref<1x8x1xf32, #tpu.memory_space<vmem>>, vector<1x8x1xf32>
    %79 = vector.shape_cast %78 : vector<1x8x1xf32> to vector<8x1xf32>
    %80 = vector.shape_cast %73 : vector<8x1xf32> to vector<1x8x1xf32>
    tpu.vector_store %arg5[%c0_56, %c0_57, %c0_58], %80 {strides = array<i32>} : memref<1x8x1xf32, #tpu.memory_space<vmem>>, vector<1x8x1xf32>,
    %81 = arith.mulf %77, %77 : vector<8x256xf32>
    %cst_59 = arith.constant dense<0.000000e+00> : vector<8xf32>
    %82 = vector.multi_reduction <add>, %81, %cst_59 [1] : vector<8x256xf32> to vector<8xf32>
    %83 = vector.shape_cast %82 : vector<8xf32> to vector<8x1xf32>
    %c0_60 = arith.constant 0 : index
    %c0_61 = arith.constant 0 : index
    %c0_62 = arith.constant 0 : index
    %84 = vector.load %arg6[%c0_60, %c0_61, %c0_62] : memref<1x8x1xf32, #tpu.memory_space<vmem>>, vector<1x8x1xf32>
    %85 = vector.shape_cast %84 : vector<1x8x1xf32> to vector<8x1xf32>
    %86 = vector.shape_cast %83 : vector<8x1xf32> to vector<1x8x1xf32>
    tpu.vector_store %arg6[%c0_60, %c0_61, %c0_62], %86 {strides = array<i32>} : memref<1x8x1xf32, #tpu.memory_space<vmem>>, vector<1x8x1xf32>,
    return
  }
  func.func @transform_0(%arg0: i32) -> (i32, i32, i32) {
    %c0_i32 = arith.constant 0 : i32
    %c0_i32_0 = arith.constant 0 : i32
    %c0_i32_1 = arith.constant 0 : i32
    return %arg0, %c0_i32, %c0_i32_0 : i32, i32, i32
  }
  func.func @transform_1(%arg0: i32) -> (i32, i32, i32) {
    %c0_i32 = arith.constant 0 : i32
    %c0_i32_0 = arith.constant 0 : i32
    %c0_i32_1 = arith.constant 0 : i32
    %c0_i32_2 = arith.constant 0 : i32
    return %c0_i32, %c0_i32_0, %c0_i32_1 : i32, i32, i32
  }
  func.func @transform_2(%arg0: i32) -> (i32, i32) {
    %c0_i32 = arith.constant 0 : i32
    %c0_i32_0 = arith.constant 0 : i32
    %c0_i32_1 = arith.constant 0 : i32
    return %c0_i32, %c0_i32_0 : i32, i32
  }
  func.func @transform_3(%arg0: i32) -> (i32, i32) {
    %c0_i32 = arith.constant 0 : i32
    %c0_i32_0 = arith.constant 0 : i32
    %c0_i32_1 = arith.constant 0 : i32
    return %c0_i32, %c0_i32_0 : i32, i32
  }
  func.func @transform_4(%arg0: i32) -> (i32, i32, i32) {
    %c0_i32 = arith.constant 0 : i32
    %c0_i32_0 = arith.constant 0 : i32
    %c0_i32_1 = arith.constant 0 : i32
    return %arg0, %c0_i32, %c0_i32_0 : i32, i32, i32
  }
  func.func @transform_5(%arg0: i32) -> (i32, i32, i32) {
    %c0_i32 = arith.constant 0 : i32
    %c0_i32_0 = arith.constant 0 : i32
    %c0_i32_1 = arith.constant 0 : i32
    return %arg0, %c0_i32, %c0_i32_0 : i32, i32, i32
  }
}

module attributes {stable_mosaic.version = 11 : i64} {
  func.func @_conv_bn_elu_kernel(%arg0: i32, %arg1: memref<1x4x290xf32, #tpu.memory_space<vmem>>, %arg2: memref<9x8x4xf32, #tpu.memory_space<vmem>>, %arg3: memref<3x256xf32, #tpu.memory_space<vmem>>, %arg4: memref<8x1xf32, #tpu.memory_space<vmem>>, %arg5: memref<8x1xf32, #tpu.memory_space<vmem>>, %arg6: memref<8x1xf32, #tpu.memory_space<vmem>>, %arg7: memref<1x8x256xf32, #tpu.memory_space<vmem>>) attributes {dimension_semantics = [#tpu.dimension_semantics<parallel>], iteration_bounds = array<i64: 2>, scalar_prefetch = 0 : i64, scratch_operands = 0 : i64, tpu.core_type = #tpu.core_type<tc>, window_params = [{transform_indices = @transform_0, window_bounds = array<i64: 1, 4, 290>}, {pipeline_mode = #tpu.pipeline_mode<synchronous>, transform_indices = @transform_1, window_bounds = array<i64: 9, 8, 4>}, {pipeline_mode = #tpu.pipeline_mode<synchronous>, transform_indices = @transform_2, window_bounds = array<i64: 3, 256>}, {pipeline_mode = #tpu.pipeline_mode<synchronous>, transform_indices = @transform_3, window_bounds = array<i64: 8, 1>}, {pipeline_mode = #tpu.pipeline_mode<synchronous>, transform_indices = @transform_4, window_bounds = array<i64: 8, 1>}, {pipeline_mode = #tpu.pipeline_mode<synchronous>, transform_indices = @transform_5, window_bounds = array<i64: 8, 1>}, {transform_indices = @transform_6, window_bounds = array<i64: 1, 8, 256>}]} {
    %cst = arith.constant 0.000000e+00 : f32
    %0 = vector.broadcast %cst : f32 to vector<8x256xf32>
    %c0 = arith.constant 0 : index
    %c0_0 = arith.constant 0 : index
    %1 = vector.load %arg3[%c0, %c0_0] : memref<3x256xf32, #tpu.memory_space<vmem>>, vector<1x256xf32>
    %c0_1 = arith.constant 0 : index
    %c0_2 = arith.constant 0 : index
    %c0_3 = arith.constant 0 : index
    %2 = vector.load %arg1[%c0_1, %c0_2, %c0_3] : memref<1x4x290xf32, #tpu.memory_space<vmem>>, vector<1x4x256xf32>
    %3 = vector.shape_cast %2 : vector<1x4x256xf32> to vector<4x256xf32>
    %4 = vector.broadcast %1 : vector<1x256xf32> to vector<4x256xf32>
    %5 = arith.mulf %3, %4 : vector<4x256xf32>
    %c0_4 = arith.constant 0 : index
    %c0_5 = arith.constant 0 : index
    %c0_6 = arith.constant 0 : index
    %6 = vector.load %arg2[%c0_4, %c0_5, %c0_6] : memref<9x8x4xf32, #tpu.memory_space<vmem>>, vector<1x8x4xf32>
    %7 = vector.shape_cast %6 : vector<1x8x4xf32> to vector<8x4xf32>
    %cst_7 = arith.constant dense<0.000000e+00> : vector<8x256xf32>
    %8 = tpu.matmul %7, %5, %cst_7 {dimension_numbers = #tpu.dot_dimension_numbers<[1], [0], [0], [1], [0, 0, 1, 1], [], []>} : vector<8x4xf32>, vector<4x256xf32>, vector<8x256xf32> -> vector<8x256xf32>
    %9 = arith.addf %0, %8 : vector<8x256xf32>
    %c0_8 = arith.constant 0 : index
    %c0_9 = arith.constant 0 : index
    %c16 = arith.constant 16 : index
    %10 = vector.load %arg1[%c0_8, %c0_9, %c16] : memref<1x4x290xf32, #tpu.memory_space<vmem>>, vector<1x4x256xf32>
    %11 = vector.shape_cast %10 : vector<1x4x256xf32> to vector<4x256xf32>
    %12 = vector.broadcast %1 : vector<1x256xf32> to vector<4x256xf32>
    %13 = arith.mulf %11, %12 : vector<4x256xf32>
    %c3 = arith.constant 3 : index
    %c0_10 = arith.constant 0 : index
    %c0_11 = arith.constant 0 : index
    %14 = vector.load %arg2[%c3, %c0_10, %c0_11] : memref<9x8x4xf32, #tpu.memory_space<vmem>>, vector<1x8x4xf32>
    %15 = vector.shape_cast %14 : vector<1x8x4xf32> to vector<8x4xf32>
    %cst_12 = arith.constant dense<0.000000e+00> : vector<8x256xf32>
    %16 = tpu.matmul %15, %13, %cst_12 {dimension_numbers = #tpu.dot_dimension_numbers<[1], [0], [0], [1], [0, 0, 1, 1], [], []>} : vector<8x4xf32>, vector<4x256xf32>, vector<8x256xf32> -> vector<8x256xf32>
    %17 = arith.addf %9, %16 : vector<8x256xf32>
    %c0_13 = arith.constant 0 : index
    %c0_14 = arith.constant 0 : index
    %c32 = arith.constant 32 : index
    %18 = vector.load %arg1[%c0_13, %c0_14, %c32] : memref<1x4x290xf32, #tpu.memory_space<vmem>>, vector<1x4x256xf32>
    %19 = vector.shape_cast %18 : vector<1x4x256xf32> to vector<4x256xf32>
    %20 = vector.broadcast %1 : vector<1x256xf32> to vector<4x256xf32>
    %21 = arith.mulf %19, %20 : vector<4x256xf32>
    %c6 = arith.constant 6 : index
    %c0_15 = arith.constant 0 : index
    %c0_16 = arith.constant 0 : index
    %22 = vector.load %arg2[%c6, %c0_15, %c0_16] : memref<9x8x4xf32, #tpu.memory_space<vmem>>, vector<1x8x4xf32>
    %23 = vector.shape_cast %22 : vector<1x8x4xf32> to vector<8x4xf32>
    %cst_17 = arith.constant dense<0.000000e+00> : vector<8x256xf32>
    %24 = tpu.matmul %23, %21, %cst_17 {dimension_numbers = #tpu.dot_dimension_numbers<[1], [0], [0], [1], [0, 0, 1, 1], [], []>} : vector<8x4xf32>, vector<4x256xf32>, vector<8x256xf32> -> vector<8x256xf32>
    %25 = arith.addf %17, %24 : vector<8x256xf32>
    %c0_18 = arith.constant 0 : index
    %c0_19 = arith.constant 0 : index
    %c1 = arith.constant 1 : index
    %26 = vector.load %arg1[%c0_18, %c0_19, %c1] : memref<1x4x290xf32, #tpu.memory_space<vmem>>, vector<1x4x256xf32>
    %27 = vector.shape_cast %26 : vector<1x4x256xf32> to vector<4x256xf32>
    %c1_20 = arith.constant 1 : index
    %c0_21 = arith.constant 0 : index
    %c0_22 = arith.constant 0 : index
    %28 = vector.load %arg2[%c1_20, %c0_21, %c0_22] : memref<9x8x4xf32, #tpu.memory_space<vmem>>, vector<1x8x4xf32>
    %29 = vector.shape_cast %28 : vector<1x8x4xf32> to vector<8x4xf32>
    %cst_23 = arith.constant dense<0.000000e+00> : vector<8x256xf32>
    %30 = tpu.matmul %29, %27, %cst_23 {dimension_numbers = #tpu.dot_dimension_numbers<[1], [0], [0], [1], [0, 0, 1, 1], [], []>} : vector<8x4xf32>, vector<4x256xf32>, vector<8x256xf32> -> vector<8x256xf32>
    %31 = arith.addf %25, %30 : vector<8x256xf32>
    %c0_24 = arith.constant 0 : index
    %c0_25 = arith.constant 0 : index
    %c17 = arith.constant 17 : index
    %32 = vector.load %arg1[%c0_24, %c0_25, %c17] : memref<1x4x290xf32, #tpu.memory_space<vmem>>, vector<1x4x256xf32>
    %33 = vector.shape_cast %32 : vector<1x4x256xf32> to vector<4x256xf32>
    %c4 = arith.constant 4 : index
    %c0_26 = arith.constant 0 : index
    %c0_27 = arith.constant 0 : index
    %34 = vector.load %arg2[%c4, %c0_26, %c0_27] : memref<9x8x4xf32, #tpu.memory_space<vmem>>, vector<1x8x4xf32>
    %35 = vector.shape_cast %34 : vector<1x8x4xf32> to vector<8x4xf32>
    %cst_28 = arith.constant dense<0.000000e+00> : vector<8x256xf32>
    %36 = tpu.matmul %35, %33, %cst_28 {dimension_numbers = #tpu.dot_dimension_numbers<[1], [0], [0], [1], [0, 0, 1, 1], [], []>} : vector<8x4xf32>, vector<4x256xf32>, vector<8x256xf32> -> vector<8x256xf32>
    %37 = arith.addf %31, %36 : vector<8x256xf32>
    %c0_29 = arith.constant 0 : index
    %c0_30 = arith.constant 0 : index
    %c33 = arith.constant 33 : index
    %38 = vector.load %arg1[%c0_29, %c0_30, %c33] : memref<1x4x290xf32, #tpu.memory_space<vmem>>, vector<1x4x256xf32>
    %39 = vector.shape_cast %38 : vector<1x4x256xf32> to vector<4x256xf32>
    %c7 = arith.constant 7 : index
    %c0_31 = arith.constant 0 : index
    %c0_32 = arith.constant 0 : index
    %40 = vector.load %arg2[%c7, %c0_31, %c0_32] : memref<9x8x4xf32, #tpu.memory_space<vmem>>, vector<1x8x4xf32>
    %41 = vector.shape_cast %40 : vector<1x8x4xf32> to vector<8x4xf32>
    %cst_33 = arith.constant dense<0.000000e+00> : vector<8x256xf32>
    %42 = tpu.matmul %41, %39, %cst_33 {dimension_numbers = #tpu.dot_dimension_numbers<[1], [0], [0], [1], [0, 0, 1, 1], [], []>} : vector<8x4xf32>, vector<4x256xf32>, vector<8x256xf32> -> vector<8x256xf32>
    %43 = arith.addf %37, %42 : vector<8x256xf32>
    %c2 = arith.constant 2 : index
    %c0_34 = arith.constant 0 : index
    %44 = vector.load %arg3[%c2, %c0_34] : memref<3x256xf32, #tpu.memory_space<vmem>>, vector<1x256xf32>
    %c0_35 = arith.constant 0 : index
    %c0_36 = arith.constant 0 : index
    %c2_37 = arith.constant 2 : index
    %45 = vector.load %arg1[%c0_35, %c0_36, %c2_37] : memref<1x4x290xf32, #tpu.memory_space<vmem>>, vector<1x4x256xf32>
    %46 = vector.shape_cast %45 : vector<1x4x256xf32> to vector<4x256xf32>
    %47 = vector.broadcast %44 : vector<1x256xf32> to vector<4x256xf32>
    %48 = arith.mulf %46, %47 : vector<4x256xf32>
    %c2_38 = arith.constant 2 : index
    %c0_39 = arith.constant 0 : index
    %c0_40 = arith.constant 0 : index
    %49 = vector.load %arg2[%c2_38, %c0_39, %c0_40] : memref<9x8x4xf32, #tpu.memory_space<vmem>>, vector<1x8x4xf32>
    %50 = vector.shape_cast %49 : vector<1x8x4xf32> to vector<8x4xf32>
    %cst_41 = arith.constant dense<0.000000e+00> : vector<8x256xf32>
    %51 = tpu.matmul %50, %48, %cst_41 {dimension_numbers = #tpu.dot_dimension_numbers<[1], [0], [0], [1], [0, 0, 1, 1], [], []>} : vector<8x4xf32>, vector<4x256xf32>, vector<8x256xf32> -> vector<8x256xf32>
    %52 = arith.addf %43, %51 : vector<8x256xf32>
    %c0_42 = arith.constant 0 : index
    %c0_43 = arith.constant 0 : index
    %c18 = arith.constant 18 : index
    %53 = vector.load %arg1[%c0_42, %c0_43, %c18] : memref<1x4x290xf32, #tpu.memory_space<vmem>>, vector<1x4x256xf32>
    %54 = vector.shape_cast %53 : vector<1x4x256xf32> to vector<4x256xf32>
    %55 = vector.broadcast %44 : vector<1x256xf32> to vector<4x256xf32>
    %56 = arith.mulf %54, %55 : vector<4x256xf32>
    %c5 = arith.constant 5 : index
    %c0_44 = arith.constant 0 : index
    %c0_45 = arith.constant 0 : index
    %57 = vector.load %arg2[%c5, %c0_44, %c0_45] : memref<9x8x4xf32, #tpu.memory_space<vmem>>, vector<1x8x4xf32>
    %58 = vector.shape_cast %57 : vector<1x8x4xf32> to vector<8x4xf32>
    %cst_46 = arith.constant dense<0.000000e+00> : vector<8x256xf32>
    %59 = tpu.matmul %58, %56, %cst_46 {dimension_numbers = #tpu.dot_dimension_numbers<[1], [0], [0], [1], [0, 0, 1, 1], [], []>} : vector<8x4xf32>, vector<4x256xf32>, vector<8x256xf32> -> vector<8x256xf32>
    %60 = arith.addf %52, %59 : vector<8x256xf32>
    %c0_47 = arith.constant 0 : index
    %c0_48 = arith.constant 0 : index
    %c34 = arith.constant 34 : index
    %61 = vector.load %arg1[%c0_47, %c0_48, %c34] : memref<1x4x290xf32, #tpu.memory_space<vmem>>, vector<1x4x256xf32>
    %62 = vector.shape_cast %61 : vector<1x4x256xf32> to vector<4x256xf32>
    %63 = vector.broadcast %44 : vector<1x256xf32> to vector<4x256xf32>
    %64 = arith.mulf %62, %63 : vector<4x256xf32>
    %c8 = arith.constant 8 : index
    %c0_49 = arith.constant 0 : index
    %c0_50 = arith.constant 0 : index
    %65 = vector.load %arg2[%c8, %c0_49, %c0_50] : memref<9x8x4xf32, #tpu.memory_space<vmem>>, vector<1x8x4xf32>
    %66 = vector.shape_cast %65 : vector<1x8x4xf32> to vector<8x4xf32>
    %cst_51 = arith.constant dense<0.000000e+00> : vector<8x256xf32>
    %67 = tpu.matmul %66, %64, %cst_51 {dimension_numbers = #tpu.dot_dimension_numbers<[1], [0], [0], [1], [0, 0, 1, 1], [], []>} : vector<8x4xf32>, vector<4x256xf32>, vector<8x256xf32> -> vector<8x256xf32>
    %68 = arith.addf %60, %67 : vector<8x256xf32>
    %c0_52 = arith.constant 0 : index
    %c0_53 = arith.constant 0 : index
    %69 = vector.load %arg4[%c0_52, %c0_53] : memref<8x1xf32, #tpu.memory_space<vmem>>, vector<8x1xf32>
    %70 = vector.broadcast %69 : vector<8x1xf32> to vector<8x256xf32>
    %71 = arith.addf %68, %70 : vector<8x256xf32>
    %c0_54 = arith.constant 0 : index
    %c0_55 = arith.constant 0 : index
    %72 = vector.load %arg5[%c0_54, %c0_55] : memref<8x1xf32, #tpu.memory_space<vmem>>, vector<8x1xf32>
    %73 = vector.broadcast %72 : vector<8x1xf32> to vector<8x256xf32>
    %74 = arith.mulf %71, %73 : vector<8x256xf32>
    %c0_56 = arith.constant 0 : index
    %c0_57 = arith.constant 0 : index
    %75 = vector.load %arg6[%c0_56, %c0_57] : memref<8x1xf32, #tpu.memory_space<vmem>>, vector<8x1xf32>
    %76 = vector.broadcast %75 : vector<8x1xf32> to vector<8x256xf32>
    %77 = arith.addf %74, %76 : vector<8x256xf32>
    %cst_58 = arith.constant 0.000000e+00 : f32
    %78 = vector.broadcast %cst_58 : f32 to vector<8x256xf32>
    %79 = arith.cmpf ogt, %77, %78 : vector<8x256xf32>
    %cst_59 = arith.constant 0.000000e+00 : f32
    %80 = vector.broadcast %cst_59 : f32 to vector<8x256xf32>
    %81 = arith.minimumf %77, %80 : vector<8x256xf32>
    %82 = math.exp %81 : vector<8x256xf32>
    %cst_60 = arith.constant 1.000000e+00 : f32
    %83 = vector.broadcast %cst_60 : f32 to vector<8x256xf32>
    %84 = arith.subf %82, %83 : vector<8x256xf32>
    %85 = arith.select %79, %77, %84 : vector<8x256xi1>, vector<8x256xf32>
    %c0_61 = arith.constant 0 : index
    %c0_62 = arith.constant 0 : index
    %c0_63 = arith.constant 0 : index
    %86 = vector.load %arg7[%c0_61, %c0_62, %c0_63] : memref<1x8x256xf32, #tpu.memory_space<vmem>>, vector<1x8x256xf32>
    %87 = vector.shape_cast %86 : vector<1x8x256xf32> to vector<8x256xf32>
    %88 = vector.shape_cast %85 : vector<8x256xf32> to vector<1x8x256xf32>
    tpu.vector_store %arg7[%c0_61, %c0_62, %c0_63], %88 {strides = array<i32>} : memref<1x8x256xf32, #tpu.memory_space<vmem>>, vector<1x8x256xf32>,
    return
  }
  func.func @transform_0(%arg0: i32) -> (i32, i32, i32) {
    %c0_i32 = arith.constant 0 : i32
    %c0_i32_0 = arith.constant 0 : i32
    %c0_i32_1 = arith.constant 0 : i32
    return %arg0, %c0_i32, %c0_i32_0 : i32, i32, i32
  }
  func.func @transform_1(%arg0: i32) -> (i32, i32, i32) {
    %c0_i32 = arith.constant 0 : i32
    %c0_i32_0 = arith.constant 0 : i32
    %c0_i32_1 = arith.constant 0 : i32
    %c0_i32_2 = arith.constant 0 : i32
    return %c0_i32, %c0_i32_0, %c0_i32_1 : i32, i32, i32
  }
  func.func @transform_2(%arg0: i32) -> (i32, i32) {
    %c0_i32 = arith.constant 0 : i32
    %c0_i32_0 = arith.constant 0 : i32
    %c0_i32_1 = arith.constant 0 : i32
    return %c0_i32, %c0_i32_0 : i32, i32
  }
  func.func @transform_3(%arg0: i32) -> (i32, i32) {
    %c0_i32 = arith.constant 0 : i32
    %c0_i32_0 = arith.constant 0 : i32
    %c0_i32_1 = arith.constant 0 : i32
    return %c0_i32, %c0_i32_0 : i32, i32
  }
  func.func @transform_4(%arg0: i32) -> (i32, i32) {
    %c0_i32 = arith.constant 0 : i32
    %c0_i32_0 = arith.constant 0 : i32
    %c0_i32_1 = arith.constant 0 : i32
    return %c0_i32, %c0_i32_0 : i32, i32
  }
  func.func @transform_5(%arg0: i32) -> (i32, i32) {
    %c0_i32 = arith.constant 0 : i32
    %c0_i32_0 = arith.constant 0 : i32
    %c0_i32_1 = arith.constant 0 : i32
    return %c0_i32, %c0_i32_0 : i32, i32
  }
  func.func @transform_6(%arg0: i32) -> (i32, i32, i32) {
    %c0_i32 = arith.constant 0 : i32
    %c0_i32_0 = arith.constant 0 : i32
    %c0_i32_1 = arith.constant 0 : i32
    return %arg0, %c0_i32, %c0_i32_0 : i32, i32, i32
  }
}

</mosaic_0001>

<bundles_post_ra>
// kernel: conv_block_forward.2
= control target key start
LH: loop header
LB: loop body
LE: loop exit
PB: predicated region body
PF: predicated region fallthrough
CT: control target
= control target key end

     0   :  { %s1385_s18 = smov 0   ;;  %s1523_s0 = inlined_call_operand.vmem [shape: f32[2,4,290], index: 0, kind: input, shape index: {}]   ;;  %s1524_s1 = inlined_call_operand.vmem [shape: f32[9,8,4], index: 1, kind: input, shape index: {}]   ;;  %s1525_s2 = inlined_call_operand.vmem [shape: f32[3,256], index: 2, kind: input, shape index: {}]   ;;  %s1526_s3 = inlined_call_operand.vmem [shape: f32[8,1], index: 3, kind: input, shape index: {}]   ;;  %s1527_s4 = inlined_call_operand.vmem [shape: f32[2,8,1], index: 4, kind: output, shape index: {0}]   ;;  %s1528_s5 = inlined_call_operand.vmem [shape: f32[2,8,1], index: 5, kind: output, shape index: {1}]  }
   0x1 LB: > { %s1259_s19 = sadd.s32 4294967295, %s1338_s18   ;;  %p1263_p0 = scmp.ge.s32.totalorder %s1338_s18, 1  ;;  %s1338_s18 = sphi %s1385_s18, %s16_s18  }
   0x2   : > { %p190_p1 = scmp.lt.s32.totalorder %s1338_s18, 3 }
   0x4   : > { %p191_p2 = pnand %p1263_p0, %p190_p1 }
   0x5   : > { %p221_p3 = scmp.lt.s32.totalorder (!%p191_p2), %s1259_s19, 1  ;;  %s1340_s28 = smov (!%p191_p2), 16  }
   0x6   : > { %194 = sbr.rel (%p191_p2) target bundleno = 772 (0x304), region = 36  ;;  %s1341_s29 = smov (!%p191_p2), 2  }
   0x7   : > { %s1342_s30 = smov (!%p191_p2), 32   ;;  %s1343_s6 = smov (!%p191_p2), 18  }
   0x8   : > { %s1344_s7 = smov (!%p191_p2), 34   ;;  %s1345_s8 = smov (!%p191_p2), 127  }
   0x9   : > { %s1346_s9 = smov (!%p191_p2), 111   ;;  %s1347_s10 = smov (!%p191_p2), 95  }
   0xa   : > { %s1349_s13 = smov (!%p191_p2), 112   ;;  %s1350_s14 = smov (!%p191_p2), 96  }
   0xb   : > { %v237_v0 = vlaneseq  ;;  %v234_v2 = vld [vmem:[%s1525_s2] ss:$4 sm:$0x3]  ;;  %v1290_v3 = vld [vmem:[%s1525_s2 + $0x2] ss:$4 sm:$0x3] }
   0xc   : > { %s1530_s19 = smov (!%p221_p3, %s1259_s19), 1  ;;  %v1348_v18 = vmov 0.0   ;;  %vm277_vm0 = vcmask 1043456   ;;  %v248_v20 = vld [vmem:[%s1524_s1] sm:$0xff]  ;;  %vm273_vm1 = vcmask 31744   ;;  %vm438_vm2 = vcmask 261120  }
   0xd   : > { %v238_v1 = vshrl.u32 %v237_v0, 7  ;;  %s1305_s24 = smul.u32 12, %s1530_s19  ;;  %426 = vmatprep.mubr.f32.mxu1 %v1348_v18  ;;  %346 = vmatprep.mubr.f32.mxu0 %v1348_v18  ;;  %vm253_vm3 = vcmask 130048   ;;  %vm843_vm4 = vcmask 15360   ;;  %vm551_vm5 = vcmask 1039360   ;;  %v1278_v44 = vld [vmem:[%s1524_s1 + $0x8] sm:$0xff] }
   0xe   : > { %s1351_s17 = smov 126   ;;  %vm647_vm6 = vcmask 908288   ;;  %vm948_vm7 = vcmask 146432   ;;  %vm1053_vm8 = vcmask 277504   ;;  %s1352_s20 = smov 110   ;;  %vm743_vm9 = vcmask 777216  }
   0xf   : > { %v239_v4 = vsub.s32 0, %v238_v1  ;;  %v243_v5 = vsub.s32 1, %v238_v1  ;;  %s1405_s27 = scalar_lea.vmem %s1523_s0, %s1305_s24  ;;  %s1354_s23 = smov 94   ;;  %vm270_vm10 = vcmask 916480   ;;  %vm455_vm11 = vcmask 785408  }
  0x10   : > { %v1408_v12 = vld [vmem:[%s1405_s27] sm:$0xff]  ;;  %v539_v14 = vld [vmem:[%s1405_s27 + $0x8] sm:$0xf]  ;;  %vm860_vm12 = vcmask 1031168   ;;  %vm965_vm13 = vcmask 900096   ;;  %vm1070_vm14 = vcmask 769024  }
  0x11   : > { %v240_v6 = vrot.slane %v234_v2, %v239_v4  ;;  %v244_v7 = vrot.slane %v234_v2, %v243_v5  ;;  %v834_v8 = vrot.slane %v1290_v3, %v239_v4  ;;  %v838_v9 = vrot.slane %v1290_v3, %v243_v5  ;;  %v635_v15 = vld [vmem:[%s1405_s27 + $0x8] sm:$0xf]  ;;  %v1286_v5 = vld [vmem:[%s1524_s1 + $0x38] sm:$0xff] }
  0x12   : > { %v544_v13 = vcombine.high %v1408_v12, %v1408_v12  ;;  %v731_v17 = vld [vmem:[%s1405_s27 + $0x8] sm:$0xf]  ;;  %v1353_v2 = vmov 0   ;;  %vm1167_vm15 = vcmask 7168  }
  0x13   : > { %v245_v10 = vcombine.low %v240_v6, %v244_v7  ;;  %v839_v11 = vcombine.low %v834_v8, %v838_v9  ;;  %v249_v22 = vld [vmem:[%s1405_s27 + $0x8] sm:$0xf]  ;;  %1329 = vset.pattern.permute.xlu1 %v1353_v2  ;;  %1330 = vset.pattern.permute.xlu0 %v1353_v2 }
  0x14   : > { %v434_v27 = vld [vmem:[%s1405_s27 + $0x8] sm:$0xf] }
  0x15   : > { %250 = vrot.lane.b32.xlu0 %v245_v10, %s1340_s28  ;;  %840 = vrot.lane.b32.xlu1 %v839_v11, %s1341_s29  ;;  %v247_v16 = vmul.f32 %v1408_v12, %v245_v10  ;;  %v944_v45 = vld [vmem:[%s1405_s27 + $0x8] sm:$0xf] }
  0x16   : > { %v829_v47 = vld [vmem:[%s1405_s27 + $0x8] sm:$0xf] }
  0x17   : > { %v354_v19 = vcombine.high %v247_v16, %v247_v16  ;;  %v1049_v7 = vld [vmem:[%s1405_s27 + $0x8] sm:$0xf] }
  0x19   : > { %435 = vrot.lane.b32.xlu0 %v245_v10, %s1342_s30  ;;  %945 = vrot.lane.b32.xlu1 %v839_v11, %s1343_s6  ;;  %v1153_v10 = vld [vmem:[%s1526_s3] sm:$0xff] }
  0x1a   : > { %1271 = vmatprep.subr.msk.mxu1 %vm277_vm0, %v354_v19 }
  0x1b   : > { %1272 = vmatpush1.msk.msra.mxu1 %vm277_vm0, %v247_v16 }
  0x1c   : > { %1273 = vmatmul.mubr.msk.f32.vlgmr.msra.gmra.mxu1 %vm273_vm1, %v248_v20 }
  0x1d   : > { %1050 = vrot.lane.b32.xlu0 %v839_v11, %s1344_s7  ;;  %547 = vrot.lane.b32.xlu1 %v544_v13, %s1345_s8 }
  0x1e   : > { %625 = vmatprep.mubr.f32.mxu1 %v1348_v18 }
  0x21   : > { %549 = vrot.lane.b32.xlu0 %v539_v14, %s1345_s8  ;;  %545 = vrot.lane.b32.xlu1 %v1408_v12, %s1345_s8 }
  0x25   : > { %643 = vrot.lane.b32.xlu0 %v544_v13, %s1346_s9  ;;  %645 = vrot.lane.b32.xlu1 %v635_v15, %s1346_s9 }
  0x29   : > { %641 = vrot.lane.b32.xlu0 %v1408_v12, %s1346_s9  ;;  %739 = vrot.lane.b32.xlu1 %v544_v13, %s1347_s10 }
  0x2d   : > { %741 = vrot.lane.b32.xlu0 %v731_v17, %s1347_s10  ;;  %737 = vrot.lane.b32.xlu1 %v1408_v12, %s1347_s10 }
  0x87   : > { %v251_v21 = vpop.permute.xlu0 %250  ;;  %v841_v23 = vpop.permute.xlu1 %840 }
  0x88   : > { %v252_v24 = vrot.slane %v251_v21, 4  ;;  %v842_v30 = vrot.slane %v841_v23, 4 }
  0x8a   : > { %v258_v25 = vmul.f32 %v252_v24, %v249_v22  ;;  %v254_v33 = vsel %vm253_vm3, %v252_v24, %v251_v21  ;;  %v844_v37 = vsel %vm843_vm4, %v842_v30, %v841_v23  ;;  %v848_v55 = vmul.f32 %v842_v30, %v829_v47  ;;  %v1267_v21 = vld [vmem:[%s1524_s1 + $0x18] sm:$0xff] }
  0x8b   : > { %v436_v26 = vpop.permute.xlu0 %435  ;;  %v946_v28 = vpop.permute.xlu1 %945  ;;  %v257_v38 = vmul.f32 %v1408_v12, %v254_v33  ;;  %v847_v39 = vmul.f32 %v844_v37, %v1408_v12  ;;  %v1295_v37 = vld [vmem:[%s1524_s1 + $0x28] sm:$0xff] }
  0x8c   : > { %v437_v29 = vrot.slane %v436_v26, 4  ;;  %268 = vrot.lane.b32.xlu0 %v258_v25, %s1349_s13  ;;  %v947_v48 = vrot.slane %v946_v28, 4 }
  0x8d   : > { %v263_v46 = vcombine.high %v257_v38, %v257_v38  ;;  %v853_v63 = vcombine.high %v847_v39, %v847_v39 }
  0x8e   : > { %v439_v31 = vsel %vm438_vm2, %v437_v29, %v436_v26  ;;  %v443_v32 = vmul.f32 %v437_v29, %v434_v27  ;;  %v953_v54 = vmul.f32 %v947_v48, %v944_v45  ;;  %v949_v56 = vsel %vm948_vm7, %v947_v48, %v946_v28  ;;  %v1274_v26 = vld [vmem:[%s1524_s1 + $0x30] sm:$0xff]  ;;  %v1282_v29 = vld [vmem:[%s1524_s1 + $0x20] sm:$0xff] }
  0x8f   : > { %v442_v34 = vmul.f32 %v1408_v12, %v439_v31  ;;  %v1432_v35 = vpop.permute.xlu0 %1050  ;;  %v548_v36 = vpop.permute.xlu1 %547  ;;  %v952_v61 = vmul.f32 %v949_v56, %v1408_v12 }
  0x90   : > { %453 = vrot.lane.b32.xlu1 %v443_v32, %s1350_s14  ;;  %v1052_v52 = vrot.slane %v1432_v35, 4 }
  0x91   : > { %449 = vrot.lane.b32.xlu0 %v442_v34, %s1350_s14  ;;  %v448_v49 = vcombine.high %v442_v34, %v442_v34  ;;  %v958_v6 = vcombine.high %v952_v61, %v952_v61 }
  0x92   : > { %v1054_v59 = vsel %vm1053_vm8, %v1052_v52, %v1432_v35  ;;  %v1058_v9 = vmul.f32 %v1052_v52, %v1049_v7 }
  0x93   : > { %v550_v40 = vpop.permute.xlu0 %549  ;;  %v546_v41 = vpop.permute.xlu1 %545  ;;  %v1057_v62 = vmul.f32 %v1054_v59, %v1408_v12 }
  0x94   : > { %264 = vrot.lane.b32.xlu1 %v257_v38, %s1349_s13  ;;  %v553_v42 = vsel %vm551_vm5, %v548_v36, %v550_v40  ;;  %v552_v43 = vsel %vm551_vm5, %v546_v41, %v548_v36  ;;  %v1291_v36 = vld [vmem:[%s1524_s1 + $0x10] sm:$0xff]  ;;  %v1299_v41 = vld [vmem:[%s1524_s1 + $0x40] sm:$0xff] }
  0x95   : > { %854 = vrot.lane.b32.xlu0 %v847_v39, %s1351_s17  ;;  %1279 = vmatprep.subr.msk.mxu1 %vm277_vm0, %v553_v42  ;;  %v1063_v8 = vcombine.high %v1057_v62, %v1057_v62 }
  0x96   : > { %1280 = vmatpush1.msk.msra.mxu1 %vm277_vm0, %v552_v43 }
  0x97   : > { %v644_v50 = vpop.permute.xlu0 %643  ;;  %v646_v51 = vpop.permute.xlu1 %645  ;;  %1281 = vmatmul.mubr.msk.f32.vlgmr.msra.gmra.mxu1 %vm273_vm1, %v1278_v44 }
  0x98   : > { %266 = vrot.lane.b32.xlu1 %v263_v46, %s1349_s13  ;;  %v1451_v53 = vsel %vm647_vm6, %v644_v50, %v646_v51  ;;  %817 = vmatprep.mubr.f32.mxu1 %v1348_v18  ;;  %s1265_s13 = sshll.u32 %s1530_s19, 3 }
  0x99   : > { %451 = vrot.lane.b32.xlu0 %v448_v49, %s1350_s14  ;;  %s229_s16 = scalar_lea.vmem %s1527_s4, %s1265_s13  ;;  %s233_s21 = scalar_lea.vmem %s1528_s5, %s1265_s13 }
  0x9b   : > { %v642_v57 = vpop.permute.xlu0 %641  ;;  %v740_v58 = vpop.permute.xlu1 %739 }
  0x9c   : > { %858 = vrot.lane.b32.xlu1 %v848_v55, %s1351_s17  ;;  %v648_v60 = vsel %vm647_vm6, %v642_v57, %v644_v50 }
  0x9d   : > { %963 = vrot.lane.b32.xlu0 %v953_v54, %s1352_s20 }
  0x9f   : > { %v742_v0 = vpop.permute.xlu0 %741  ;;  %v738_v1 = vpop.permute.xlu1 %737 }
  0xa0   : > { %959 = vrot.lane.b32.xlu1 %v952_v61, %s1352_s20  ;;  %v745_v3 = vsel %vm743_vm9, %v740_v58, %v742_v0  ;;  %v744_v4 = vsel %vm743_vm9, %v738_v1, %v740_v58 }
  0xa1   : > { %856 = vrot.lane.b32.xlu0 %v853_v63, %s1351_s17  ;;  %1287 = vmatprep.subr.msk.mxu1 %vm277_vm0, %v745_v3 }
  0xa2   : > { %1288 = vmatpush1.msk.msra.mxu1 %vm277_vm0, %v744_v4 }
  0xa3   : > { %1289 = vmatmul.mubr.msk.f32.vlgmr.msra.gmra.mxu1 %vm273_vm1, %v1286_v5 }
  0xa4   : > { %961 = vrot.lane.b32.xlu1 %v958_v6, %s1352_s20  ;;  %1039 = vmatprep.mubr.f32.mxu1 %v1348_v18 }
  0xa5   : > { %1066 = vrot.lane.b32.xlu0 %v1063_v8, %s1354_s23 }
  0xa8   : > { %1068 = vrot.lane.b32.xlu1 %v1058_v9, %s1354_s23 }
  0xa9   : > { %1064 = vrot.lane.b32.xlu0 %v1057_v62, %s1354_s23 }
  0xac   : > { %1156 = vperm.xlu1 %1329, %v1153_v10  }
  0xdc   : > { %v428_v43 = vpop.f32.mrf.mxu1 }
  0xde   : > { %v430_v44 = vpop.f32.mrf.mxu1 }
  0xfe   : > { %v269_v11 = vpop.permute.xlu0 %268 }
 0x102   : > { %v454_v12 = vpop.permute.xlu1 %453 }
 0x103   : > { %v450_v13 = vpop.permute.xlu0 %449 }
 0x106   : > { %v265_v14 = vpop.permute.xlu1 %264 }
 0x107   : > { %v855_v15 = vpop.permute.xlu0 %854 }
 0x10a   : > { %v267_v16 = vpop.permute.xlu1 %266 }
 0x10b   : > { %v452_v17 = vpop.permute.xlu0 %451  ;;  %v272_v19 = vsel %vm270_vm10, %v267_v16, %v269_v11  ;;  %v271_v20 = vsel %vm270_vm10, %v265_v14, %v267_v16 }
 0x10c   : > { %v457_v22 = vsel %vm455_vm11, %v452_v17, %v454_v12  ;;  %1268 = vmatprep.subr.msk.mxu0 %vm277_vm0, %v272_v19  ;;  %v456_v23 = vsel %vm455_vm11, %v450_v13, %v452_v17 }
 0x10d   : > { %1269 = vmatpush1.msk.msra.mxu0 %vm277_vm0, %v271_v20 }
 0x10e   : > { %1270 = vmatmul.mubr.msk.f32.vlgmr.msra.gmra.mxu0 %vm273_vm1, %v1267_v21  ;;  %1275 = vmatprep.subr.msk.mxu0 %vm277_vm0, %v457_v22  ;;  %v859_v24 = vpop.permute.xlu1 %858 }
 0x10f   : > { %v964_v25 = vpop.permute.xlu0 %963  ;;  %1276 = vmatpush1.msk.msra.mxu0 %vm277_vm0, %v456_v23  ;;  %529 = vmatprep.mubr.f32.mxu0 %v1348_v18 }
 0x110   : > { %1283 = vmatprep.subr.msk.mxu0 %vm277_vm0, %v1451_v53 }
 0x112   : > { %1277 = vmatmul.mubr.msk.f32.vlgmr.msra.gmra.mxu0 %vm273_vm1, %v1274_v26  ;;  %v960_v27 = vpop.permute.xlu1 %959 }
 0x113   : > { %1284 = vmatpush1.msk.msra.mxu0 %vm277_vm0, %v648_v60  ;;  %v857_v28 = vpop.permute.xlu0 %856  ;;  %721 = vmatprep.mubr.f32.mxu0 %v1348_v18 }
 0x114   : > { %v861_v30 = vsel %vm860_vm12, %v855_v15, %v857_v28  ;;  %v862_v31 = vsel %vm860_vm12, %v857_v28, %v859_v24 }
 0x115   : > { %1292 = vmatprep.subr.msk.mxu0 %vm277_vm0, %v862_v31 }
 0x116   : > { %1285 = vmatmul.mubr.msk.f32.vlgmr.msra.gmra.mxu0 %vm273_vm1, %v1282_v29  ;;  %v962_v32 = vpop.permute.xlu1 %961 }
 0x117   : > { %1293 = vmatpush1.msk.msra.mxu0 %vm277_vm0, %v861_v30  ;;  %v966_v33 = vsel %vm965_vm13, %v960_v27, %v962_v32  ;;  %v967_v34 = vsel %vm965_vm13, %v962_v32, %v964_v25  ;;  %v1067_v35 = vpop.permute.xlu0 %1066  ;;  %934 = vmatprep.mubr.f32.mxu0 %v1348_v18 }
 0x118   : > { %1296 = vmatprep.subr.msk.mxu1 %vm277_vm0, %v967_v34 }
 0x119   : > { %1297 = vmatpush1.msk.msra.mxu1 %vm277_vm0, %v966_v33 }
 0x11a   : > { %1294 = vmatmul.mubr.msk.f32.vlgmr.msra.gmra.mxu0 %vm273_vm1, %v1291_v36  ;;  %v1069_v38 = vpop.permute.xlu1 %1068  ;;  %1298 = vmatmul.mubr.msk.f32.vlgmr.msra.gmra.mxu1 %vm273_vm1, %v1295_v37 }
 0x11b   : > { %v1072_v39 = vsel %vm1070_vm14, %v1067_v35, %v1069_v38  ;;  %v1065_v40 = vpop.permute.xlu0 %1064  ;;  %1144 = vmatprep.mubr.f32.mxu0 %v1348_v18 }
 0x11c   : > { %v1071_v42 = vsel %vm1070_vm14, %v1065_v40, %v1067_v35  ;;  %1300 = vmatprep.subr.msk.mxu0 %vm277_vm0, %v1072_v39 }
 0x11d   : > { %1301 = vmatpush1.msk.msra.mxu0 %vm277_vm0, %v1071_v42 }
 0x11e   : > { %1302 = vmatmul.mubr.msk.f32.vlgmr.msra.gmra.mxu0 %vm273_vm1, %v1299_v41 }
 0x127   : > { %v1157_v11 = vpop.permute.xlu1 %1156 }
 0x157   : > { %v627_v45 = vpop.f32.mrf.mxu1 }
 0x159   : > { %v629_v47 = vpop.f32.mrf.mxu1 }
 0x163   : > { %v819_v18 = vpop.f32.mrf.mxu1 }
 0x165   : > { %v821_v57 = vpop.f32.mrf.mxu1 }
 0x1ce   : > { %v348_v46 = vpop.f32.mrf.mxu0 }
 0x1cf   : > { %v429_v49 = vadd.f32 %v428_v43, %v348_v46 }
 0x1d0   : > { %v350_v48 = vpop.f32.mrf.mxu0 }
 0x1d1   : > { %v431_v51 = vadd.f32 %v430_v44, %v350_v48 }
 0x1d2   : > { %v531_v50 = vpop.f32.mrf.mxu0 }
 0x1d3   : > { %v536_v52 = vadd.f32 %v531_v50, %v429_v49 }
 0x1d4   : > { %v533_v53 = vpop.f32.mrf.mxu0 }
 0x1d5   : > { %v537_v54 = vadd.f32 %v533_v53, %v431_v51  ;;  %v632_v55 = vadd.f32 %v627_v45, %v536_v52 }
 0x1d6   : > { %v723_v56 = vpop.f32.mrf.mxu0 }
 0x1d7   : > { %v633_v58 = vadd.f32 %v629_v47, %v537_v54  ;;  %v728_v59 = vadd.f32 %v723_v56, %v632_v55 }
 0x1d8   : > { %v725_v60 = vpop.f32.mrf.mxu0 }
 0x1d9   : > { %v729_v61 = vadd.f32 %v725_v60, %v633_v58  ;;  %v824_v62 = vadd.f32 %v819_v18, %v728_v59 }
 0x1da   : > { %v936_v63 = vpop.f32.mrf.mxu0  ;;  %v1041_v0 = vpop.f32.mrf.mxu1 }
 0x1db   : > { %v825_v1 = vadd.f32 %v821_v57, %v729_v61  ;;  %v941_v2 = vadd.f32 %v936_v63, %v824_v62 }
 0x1dc   : > { %v938_v3 = vpop.f32.mrf.mxu0  ;;  %v1043_v6 = vpop.f32.mrf.mxu1 }
 0x1dd   : > { %v942_v4 = vadd.f32 %v938_v3, %v825_v1  ;;  %v1046_v5 = vadd.f32 %v1041_v0, %v941_v2 }
 0x1de   : > { %v1146_v7 = vpop.f32.mrf.mxu0 }
 0x1df   : > { %v1047_v8 = vadd.f32 %v1043_v6, %v942_v4  ;;  %v1151_v9 = vadd.f32 %v1146_v7, %v1046_v5 }
 0x1e0   : > { %v1148_v10 = vpop.f32.mrf.mxu0 }
 0x1e1   : > { %v1152_v12 = vadd.f32 %v1148_v10, %v1047_v8  ;;  %v1159_v13 = vadd.f32 %v1157_v11, %v1151_v9 }
 0x1e3   : > { %v1160_v14 = vadd.f32 %v1157_v11, %v1152_v12 }
 0x1e5   : > { %v1161_v15 = vadd.f32 %v1160_v14, %v1159_v13 }
 0x1e7   : > { %1162 = vadd.xlane.f32.xlu0 %v1161_v15 }
 0x270   : > { %v1163_v16 = vpop.xlane.xlu0 %1162 }
 0x271   : > { %v1164_v17 = vmul.f32 0.00390625, %v1163_v16  ;;  %1168 = vst.msk [vmem:[%s229_s16] sm:$0xff] %vm1167_vm15, %v1163_v16 }
 0x273   : > { %v1165_v19 = vsub.f32 %v1159_v13, %v1164_v17  ;;  %v1166_v20 = vsub.f32 %v1160_v14, %v1164_v17 }
 0x275   : > { %v1169_v21 = vmul.f32 %v1165_v19, %v1165_v19  ;;  %v1170_v22 = vmul.f32 %v1166_v20, %v1166_v20 }
 0x277   : > { %v1171_v23 = vadd.f32 %v1170_v22, %v1169_v21 }
 0x279   : > { %1172 = vadd.xlane.f32.xlu1 %v1171_v23 }
 0x302   : > { %v1173_v24 = vpop.xlane.xlu1 %1172 }
 0x303   : > { %1174 = vst.msk [vmem:[%s233_s21] sm:$0xff] %vm1167_vm15, %v1173_v24 }
 0x304 PF: > { %s16_s18 = sadd.s32 1, %s1338_s18  }
 0x305   : > { %p13_p4 = scmp.ge.s32.totalorder %s16_s18, 4  }
 0x307   :  { %15 = sbr.rel (!%p13_p4) target bundleno = 1 (0x1), region = 87 }

// kernel: conv_block_forward.3
= control target key start
LH: loop header
LB: loop body
LE: loop exit
PB: predicated region body
PF: predicated region fallthrough
CT: control target
= control target key end

     0   :  { %s1402_s21 = smov 0   ;;  %s1546_s0 = inlined_call_operand.vmem [shape: f32[2,4,290], index: 0, kind: input, shape index: {}]   ;;  %s1547_s1 = inlined_call_operand.vmem [shape: f32[9,8,4], index: 1, kind: input, shape index: {}]   ;;  %s1548_s2 = inlined_call_operand.vmem [shape: f32[3,256], index: 2, kind: input, shape index: {}]   ;;  %s1549_s3 = inlined_call_operand.vmem [shape: f32[8,1], index: 3, kind: input, shape index: {}]   ;;  %s1550_s4 = inlined_call_operand.vmem [shape: f32[8,1], index: 4, kind: input, shape index: {}]   ;;  %s1551_s5 = inlined_call_operand.vmem [shape: f32[8,1], index: 5, kind: input, shape index: {}]   ;;  %s1552_s6 = inlined_call_operand.vmem [shape: f32[2,8,256], index: 6, kind: output, shape index: {}]  }
   0x1 LB: > { %s1264_s22 = sadd.s32 4294967295, %s1350_s21   ;;  %p1268_p0 = scmp.ge.s32.totalorder %s1350_s21, 1  ;;  %s1350_s21 = sphi %s1402_s21, %s16_s21  }
   0x2   : > { %p212_p1 = scmp.lt.s32.totalorder %s1350_s21, 3 }
   0x4   : > { %p213_p2 = pnand %p1268_p0, %p212_p1 }
   0x5   : > { %p242_p3 = scmp.lt.s32.totalorder (!%p213_p2), %s1264_s22, 1  ;;  %s1352_s7 = smov (!%p213_p2), 16  }
   0x6   : > { %216 = sbr.rel (%p213_p2) target bundleno = 511 (0x1ff), region = 44  ;;  %s1353_s8 = smov (!%p213_p2), 2  }
   0x7   : > { %s1354_s9 = smov (!%p213_p2), 32   ;;  %s1355_s10 = smov (!%p213_p2), 18  }
   0x8   : > { %s1356_s11 = smov (!%p213_p2), 34   ;;  %s1357_s12 = smov (!%p213_p2), 127  }
   0x9   : > { %s1358_s13 = smov (!%p213_p2), 111   ;;  %s1359_s14 = smov (!%p213_p2), 95  }
   0xa   : > { %s1361_s17 = smov (!%p213_p2), 112   ;;  %s1362_s18 = smov (!%p213_p2), 96  }
   0xb   : > { %v255_v0 = vlaneseq  ;;  %v252_v2 = vld [vmem:[%s1548_s2] ss:$4 sm:$0x3]  ;;  %v1295_v3 = vld [vmem:[%s1548_s2 + $0x2] ss:$4 sm:$0x3] }
   0xc   : > { %s1554_s22 = smov (!%p242_p3, %s1264_s22), 1  ;;  %v1360_v18 = vmov 0.0   ;;  %vm295_vm0 = vcmask 1043456   ;;  %v266_v20 = vld [vmem:[%s1547_s1] sm:$0xff]  ;;  %vm291_vm1 = vcmask 31744   ;;  %vm456_vm2 = vcmask 261120  }
   0xd   : > { %v256_v1 = vshrl.u32 %v255_v0, 7  ;;  %s1313_s27 = smul.u32 12, %s1554_s22  ;;  %444 = vmatprep.mubr.f32.mxu1 %v1360_v18  ;;  %364 = vmatprep.mubr.f32.mxu0 %v1360_v18  ;;  %vm271_vm3 = vcmask 130048   ;;  %vm861_vm4 = vcmask 15360   ;;  %vm569_vm5 = vcmask 1039360   ;;  %v1283_v44 = vld [vmem:[%s1547_s1 + $0x8] sm:$0xff] }
   0xe   : > { %s1363_s23 = smov 126   ;;  %vm665_vm6 = vcmask 908288   ;;  %vm966_vm7 = vcmask 146432   ;;  %vm1071_vm8 = vcmask 277504   ;;  %s1364_s24 = smov 110   ;;  %vm761_vm9 = vcmask 777216  }
   0xf   : > { %v257_v4 = vsub.s32 0, %v256_v1  ;;  %v261_v5 = vsub.s32 1, %v256_v1  ;;  %s1422_s30 = scalar_lea.vmem %s1546_s0, %s1313_s27  ;;  %s1366_s27 = smov 94   ;;  %vm288_vm10 = vcmask 916480   ;;  %vm473_vm11 = vcmask 785408  }
  0x10   : > { %v1425_v12 = vld [vmem:[%s1422_s30] sm:$0xff]  ;;  %v557_v14 = vld [vmem:[%s1422_s30 + $0x8] sm:$0xf]  ;;  %vm878_vm12 = vcmask 1031168   ;;  %vm983_vm13 = vcmask 900096   ;;  %vm1088_vm14 = vcmask 769024  }
  0x11   : > { %v258_v6 = vrot.slane %v252_v2, %v257_v4  ;;  %v262_v7 = vrot.slane %v252_v2, %v261_v5  ;;  %v852_v8 = vrot.slane %v1295_v3, %v257_v4  ;;  %v856_v9 = vrot.slane %v1295_v3, %v261_v5  ;;  %v653_v15 = vld [vmem:[%s1422_s30 + $0x8] sm:$0xf]  ;;  %v1291_v5 = vld [vmem:[%s1547_s1 + $0x38] sm:$0xff] }
  0x12   : > { %v562_v13 = vcombine.high %v1425_v12, %v1425_v12  ;;  %v749_v17 = vld [vmem:[%s1422_s30 + $0x8] sm:$0xf]  ;;  %v1365_v2 = vmov 0  }
  0x13   : > { %v263_v10 = vcombine.low %v258_v6, %v262_v7  ;;  %v857_v11 = vcombine.low %v852_v8, %v856_v9  ;;  %v267_v22 = vld [vmem:[%s1422_s30 + $0x8] sm:$0xf]  ;;  %1337 = vset.pattern.permute.xlu1 %v1365_v2  ;;  %1338 = vset.pattern.permute.xlu0 %v1365_v2 }
  0x14   : > { %v452_v27 = vld [vmem:[%s1422_s30 + $0x8] sm:$0xf] }
  0x15   : > { %268 = vrot.lane.b32.xlu0 %v263_v10, %s1352_s7  ;;  %858 = vrot.lane.b32.xlu1 %v857_v11, %s1353_s8  ;;  %v265_v16 = vmul.f32 %v1425_v12, %v263_v10  ;;  %v962_v45 = vld [vmem:[%s1422_s30 + $0x8] sm:$0xf] }
  0x16   : > { %v847_v47 = vld [vmem:[%s1422_s30 + $0x8] sm:$0xf] }
  0x17   : > { %v372_v19 = vcombine.high %v265_v16, %v265_v16  ;;  %v1067_v7 = vld [vmem:[%s1422_s30 + $0x8] sm:$0xf] }
  0x19   : > { %453 = vrot.lane.b32.xlu0 %v263_v10, %s1354_s9  ;;  %963 = vrot.lane.b32.xlu1 %v857_v11, %s1355_s10  ;;  %v1171_v10 = vld [vmem:[%s1549_s3] sm:$0xff] }
  0x1a   : > { %1276 = vmatprep.subr.msk.mxu1 %vm295_vm0, %v372_v19 }
  0x1b   : > { %1277 = vmatpush1.msk.msra.mxu1 %vm295_vm0, %v265_v16 }
  0x1c   : > { %1278 = vmatmul.mubr.msk.f32.vlgmr.msra.gmra.mxu1 %vm291_vm1, %v266_v20 }
  0x1d   : > { %1068 = vrot.lane.b32.xlu0 %v857_v11, %s1356_s11  ;;  %565 = vrot.lane.b32.xlu1 %v562_v13, %s1357_s12  ;;  %v1179_v11 = vld [vmem:[%s1550_s4] sm:$0xff] }
  0x1e   : > { %643 = vmatprep.mubr.f32.mxu1 %v1360_v18 }
  0x21   : > { %567 = vrot.lane.b32.xlu0 %v557_v14, %s1357_s12  ;;  %563 = vrot.lane.b32.xlu1 %v1425_v12, %s1357_s12 }
  0x25   : > { %661 = vrot.lane.b32.xlu0 %v562_v13, %s1358_s13  ;;  %663 = vrot.lane.b32.xlu1 %v653_v15, %s1358_s13 }
  0x29   : > { %659 = vrot.lane.b32.xlu0 %v1425_v12, %s1358_s13  ;;  %757 = vrot.lane.b32.xlu1 %v562_v13, %s1359_s14 }
  0x2d   : > { %759 = vrot.lane.b32.xlu0 %v749_v17, %s1359_s14  ;;  %755 = vrot.lane.b32.xlu1 %v1425_v12, %s1359_s14 }
  0x87   : > { %v269_v21 = vpop.permute.xlu0 %268  ;;  %v859_v23 = vpop.permute.xlu1 %858 }
  0x88   : > { %v270_v24 = vrot.slane %v269_v21, 4  ;;  %v860_v30 = vrot.slane %v859_v23, 4 }
  0x8a   : > { %v276_v25 = vmul.f32 %v270_v24, %v267_v22  ;;  %v272_v33 = vsel %vm271_vm3, %v270_v24, %v269_v21  ;;  %v862_v37 = vsel %vm861_vm4, %v860_v30, %v859_v23  ;;  %v866_v55 = vmul.f32 %v860_v30, %v847_v47  ;;  %v1272_v23 = vld [vmem:[%s1547_s1 + $0x18] sm:$0xff] }
  0x8b   : > { %v454_v26 = vpop.permute.xlu0 %453  ;;  %v964_v28 = vpop.permute.xlu1 %963  ;;  %v275_v38 = vmul.f32 %v1425_v12, %v272_v33  ;;  %v865_v39 = vmul.f32 %v862_v37, %v1425_v12 }
  0x8c   : > { %v455_v29 = vrot.slane %v454_v26, 4  ;;  %286 = vrot.lane.b32.xlu0 %v276_v25, %s1361_s17  ;;  %v965_v48 = vrot.slane %v964_v28, 4 }
  0x8d   : > { %v281_v46 = vcombine.high %v275_v38, %v275_v38  ;;  %v871_v63 = vcombine.high %v865_v39, %v865_v39 }
  0x8e   : > { %v457_v31 = vsel %vm456_vm2, %v455_v29, %v454_v26  ;;  %v461_v32 = vmul.f32 %v455_v29, %v452_v27  ;;  %v971_v54 = vmul.f32 %v965_v48, %v962_v45  ;;  %v967_v56 = vsel %vm966_vm7, %v965_v48, %v964_v28  ;;  %v1279_v28 = vld [vmem:[%s1547_s1 + $0x30] sm:$0xff] }
  0x8f   : > { %v460_v34 = vmul.f32 %v1425_v12, %v457_v31  ;;  %v1449_v35 = vpop.permute.xlu0 %1068  ;;  %v566_v36 = vpop.permute.xlu1 %565  ;;  %v970_v61 = vmul.f32 %v967_v56, %v1425_v12  ;;  %v1287_v31 = vld [vmem:[%s1547_s1 + $0x20] sm:$0xff] }
  0x90   : > { %471 = vrot.lane.b32.xlu1 %v461_v32, %s1362_s18  ;;  %v1070_v52 = vrot.slane %v1449_v35, 4 }
  0x91   : > { %467 = vrot.lane.b32.xlu0 %v460_v34, %s1362_s18  ;;  %v466_v49 = vcombine.high %v460_v34, %v460_v34  ;;  %v976_v6 = vcombine.high %v970_v61, %v970_v61 }
  0x92   : > { %v1072_v59 = vsel %vm1071_vm8, %v1070_v52, %v1449_v35  ;;  %v1076_v9 = vmul.f32 %v1070_v52, %v1067_v7 }
  0x93   : > { %v568_v40 = vpop.permute.xlu0 %567  ;;  %v564_v41 = vpop.permute.xlu1 %563  ;;  %v1075_v62 = vmul.f32 %v1072_v59, %v1425_v12  ;;  %v1187_v12 = vld [vmem:[%s1551_s5] sm:$0xff] }
  0x94   : > { %282 = vrot.lane.b32.xlu1 %v275_v38, %s1361_s17  ;;  %v571_v42 = vsel %vm569_vm5, %v566_v36, %v568_v40  ;;  %v570_v43 = vsel %vm569_vm5, %v564_v41, %v566_v36  ;;  %v1296_v38 = vld [vmem:[%s1547_s1 + $0x10] sm:$0xff] }
  0x95   : > { %872 = vrot.lane.b32.xlu0 %v865_v39, %s1363_s23  ;;  %1284 = vmatprep.subr.msk.mxu1 %vm295_vm0, %v571_v42  ;;  %v1081_v8 = vcombine.high %v1075_v62, %v1075_v62  ;;  %v1300_v39 = vld [vmem:[%s1547_s1 + $0x28] sm:$0xff] }
  0x96   : > { %1285 = vmatpush1.msk.msra.mxu1 %vm295_vm0, %v570_v43  ;;  %v1304_v43 = vld [vmem:[%s1547_s1 + $0x40] sm:$0xff] }
  0x97   : > { %v662_v50 = vpop.permute.xlu0 %661  ;;  %v664_v51 = vpop.permute.xlu1 %663  ;;  %1286 = vmatmul.mubr.msk.f32.vlgmr.msra.gmra.mxu1 %vm291_vm1, %v1283_v44 }
  0x98   : > { %284 = vrot.lane.b32.xlu1 %v281_v46, %s1361_s17  ;;  %v1468_v53 = vsel %vm665_vm6, %v662_v50, %v664_v51  ;;  %835 = vmatprep.mubr.f32.mxu1 %v1360_v18 }
  0x99   : > { %469 = vrot.lane.b32.xlu0 %v466_v49, %s1362_s18 }
  0x9b   : > { %v660_v57 = vpop.permute.xlu0 %659  ;;  %v758_v58 = vpop.permute.xlu1 %757 }
  0x9c   : > { %876 = vrot.lane.b32.xlu1 %v866_v55, %s1363_s23  ;;  %v1475_v60 = vsel %vm665_vm6, %v660_v57, %v662_v50 }
  0x9d   : > { %981 = vrot.lane.b32.xlu0 %v971_v54, %s1364_s24 }
  0x9f   : > { %v760_v0 = vpop.permute.xlu0 %759  ;;  %v756_v1 = vpop.permute.xlu1 %755 }
  0xa0   : > { %977 = vrot.lane.b32.xlu1 %v970_v61, %s1364_s24  ;;  %v763_v3 = vsel %vm761_vm9, %v758_v58, %v760_v0  ;;  %v762_v4 = vsel %vm761_vm9, %v756_v1, %v758_v58 }
  0xa1   : > { %874 = vrot.lane.b32.xlu0 %v871_v63, %s1363_s23  ;;  %1292 = vmatprep.subr.msk.mxu1 %vm295_vm0, %v763_v3 }
  0xa2   : > { %1293 = vmatpush1.msk.msra.mxu1 %vm295_vm0, %v762_v4 }
  0xa3   : > { %1294 = vmatmul.mubr.msk.f32.vlgmr.msra.gmra.mxu1 %vm291_vm1, %v1291_v5 }
  0xa4   : > { %979 = vrot.lane.b32.xlu1 %v976_v6, %s1364_s24  ;;  %1057 = vmatprep.mubr.f32.mxu1 %v1360_v18  ;;  %s1312_s24 = sshll.u32 %s1554_s22, 4 }
  0xa5   : > { %1084 = vrot.lane.b32.xlu0 %v1081_v8, %s1366_s27 }
  0xa8   : > { %1086 = vrot.lane.b32.xlu1 %v1076_v9, %s1366_s27 }
  0xa9   : > { %1082 = vrot.lane.b32.xlu0 %v1075_v62, %s1366_s27  ;;  %s251_s27 = scalar_lea.vmem %s1552_s6, %s1312_s24 }
  0xac   : > { %1174 = vperm.xlu1 %1337, %v1171_v10  }
  0xad   : > { %1182 = vperm.xlu0 %1338, %v1179_v11  }
  0xb0   : > { %1190 = vperm.xlu1 %1337, %v1187_v12  }
  0xdc   : > { %v446_v45 = vpop.f32.mrf.mxu1 }
  0xde   : > { %v448_v46 = vpop.f32.mrf.mxu1 }
  0xfe   : > { %v287_v13 = vpop.permute.xlu0 %286 }
 0x102   : > { %v472_v14 = vpop.permute.xlu1 %471 }
 0x103   : > { %v468_v15 = vpop.permute.xlu0 %467 }
 0x106   : > { %v283_v16 = vpop.permute.xlu1 %282 }
 0x107   : > { %v873_v17 = vpop.permute.xlu0 %872 }
 0x10a   : > { %v285_v19 = vpop.permute.xlu1 %284 }
 0x10b   : > { %v470_v20 = vpop.permute.xlu0 %469  ;;  %v290_v21 = vsel %vm288_vm10, %v285_v19, %v287_v13  ;;  %v289_v22 = vsel %vm288_vm10, %v283_v16, %v285_v19 }
 0x10c   : > { %v475_v24 = vsel %vm473_vm11, %v470_v20, %v472_v14  ;;  %1273 = vmatprep.subr.msk.mxu0 %vm295_vm0, %v290_v21  ;;  %v474_v25 = vsel %vm473_vm11, %v468_v15, %v470_v20 }
 0x10d   : > { %1274 = vmatpush1.msk.msra.mxu0 %vm295_vm0, %v289_v22 }
 0x10e   : > { %1275 = vmatmul.mubr.msk.f32.vlgmr.msra.gmra.mxu0 %vm291_vm1, %v1272_v23  ;;  %1280 = vmatprep.subr.msk.mxu0 %vm295_vm0, %v475_v24  ;;  %v877_v26 = vpop.permute.xlu1 %876 }
 0x10f   : > { %v982_v27 = vpop.permute.xlu0 %981  ;;  %1281 = vmatpush1.msk.msra.mxu0 %vm295_vm0, %v474_v25  ;;  %547 = vmatprep.mubr.f32.mxu0 %v1360_v18 }
 0x110   : > { %1288 = vmatprep.subr.msk.mxu0 %vm295_vm0, %v1468_v53 }
 0x112   : > { %1282 = vmatmul.mubr.msk.f32.vlgmr.msra.gmra.mxu0 %vm291_vm1, %v1279_v28  ;;  %v978_v29 = vpop.permute.xlu1 %977 }
 0x113   : > { %1289 = vmatpush1.msk.msra.mxu0 %vm295_vm0, %v1475_v60  ;;  %v875_v30 = vpop.permute.xlu0 %874  ;;  %739 = vmatprep.mubr.f32.mxu0 %v1360_v18 }
 0x114   : > { %v879_v32 = vsel %vm878_vm12, %v873_v17, %v875_v30  ;;  %v880_v33 = vsel %vm878_vm12, %v875_v30, %v877_v26 }
 0x115   : > { %1297 = vmatprep.subr.msk.mxu0 %vm295_vm0, %v880_v33 }
 0x116   : > { %1290 = vmatmul.mubr.msk.f32.vlgmr.msra.gmra.mxu0 %vm291_vm1, %v1287_v31  ;;  %v980_v34 = vpop.permute.xlu1 %979 }
 0x117   : > { %1298 = vmatpush1.msk.msra.mxu0 %vm295_vm0, %v879_v32  ;;  %v984_v35 = vsel %vm983_vm13, %v978_v29, %v980_v34  ;;  %v985_v36 = vsel %vm983_vm13, %v980_v34, %v982_v27  ;;  %v1085_v37 = vpop.permute.xlu0 %1084  ;;  %952 = vmatprep.mubr.f32.mxu0 %v1360_v18 }
 0x118   : > { %1301 = vmatprep.subr.msk.mxu1 %vm295_vm0, %v985_v36 }
 0x119   : > { %1302 = vmatpush1.msk.msra.mxu1 %vm295_vm0, %v984_v35 }
 0x11a   : > { %1299 = vmatmul.mubr.msk.f32.vlgmr.msra.gmra.mxu0 %vm291_vm1, %v1296_v38  ;;  %v1087_v40 = vpop.permute.xlu1 %1086  ;;  %1303 = vmatmul.mubr.msk.f32.vlgmr.msra.gmra.mxu1 %vm291_vm1, %v1300_v39 }
 0x11b   : > { %v1090_v41 = vsel %vm1088_vm14, %v1085_v37, %v1087_v40  ;;  %v1083_v42 = vpop.permute.xlu0 %1082  ;;  %1162 = vmatprep.mubr.f32.mxu0 %v1360_v18 }
 0x11c   : > { %v1089_v44 = vsel %vm1088_vm14, %v1083_v42, %v1085_v37  ;;  %1305 = vmatprep.subr.msk.mxu0 %vm295_vm0, %v1090_v41 }
 0x11d   : > { %1306 = vmatpush1.msk.msra.mxu0 %vm295_vm0, %v1089_v44 }
 0x11e   : > { %1307 = vmatmul.mubr.msk.f32.vlgmr.msra.gmra.mxu0 %vm291_vm1, %v1304_v43 }
 0x127   : > { %v1175_v8 = vpop.permute.xlu1 %1174 }
 0x128   : > { %v1183_v14 = vpop.permute.xlu0 %1182 }
 0x12b   : > { %v1191_v20 = vpop.permute.xlu1 %1190 }
 0x157   : > { %v645_v47 = vpop.f32.mrf.mxu1 }
 0x159   : > { %v647_v49 = vpop.f32.mrf.mxu1 }
 0x163   : > { %v837_v18 = vpop.f32.mrf.mxu1 }
 0x165   : > { %v839_v59 = vpop.f32.mrf.mxu1 }
 0x1ce   : > { %v366_v48 = vpop.f32.mrf.mxu0 }
 0x1cf   : > { %v447_v51 = vadd.f32 %v446_v45, %v366_v48 }
 0x1d0   : > { %v368_v50 = vpop.f32.mrf.mxu0 }
 0x1d1   : > { %v449_v53 = vadd.f32 %v448_v46, %v368_v50 }
 0x1d2   : > { %v549_v52 = vpop.f32.mrf.mxu0 }
 0x1d3   : > { %v554_v54 = vadd.f32 %v549_v52, %v447_v51 }
 0x1d4   : > { %v551_v55 = vpop.f32.mrf.mxu0 }
 0x1d5   : > { %v555_v56 = vadd.f32 %v551_v55, %v449_v53  ;;  %v650_v57 = vadd.f32 %v645_v47, %v554_v54 }
 0x1d6   : > { %v741_v58 = vpop.f32.mrf.mxu0 }
 0x1d7   : > { %v651_v60 = vadd.f32 %v647_v49, %v555_v56  ;;  %v746_v61 = vadd.f32 %v741_v58, %v650_v57 }
 0x1d8   : > { %v743_v62 = vpop.f32.mrf.mxu0 }
 0x1d9   : > { %v747_v63 = vadd.f32 %v743_v62, %v651_v60  ;;  %v842_v0 = vadd.f32 %v837_v18, %v746_v61 }
 0x1da   : > { %v954_v1 = vpop.f32.mrf.mxu0  ;;  %v1059_v2 = vpop.f32.mrf.mxu1 }
 0x1db   : > { %v843_v3 = vadd.f32 %v839_v59, %v747_v63  ;;  %v959_v4 = vadd.f32 %v954_v1, %v842_v0 }
 0x1dc   : > { %v956_v5 = vpop.f32.mrf.mxu0  ;;  %v1061_v9 = vpop.f32.mrf.mxu1 }
 0x1dd   : > { %v960_v6 = vadd.f32 %v956_v5, %v843_v3  ;;  %v1064_v7 = vadd.f32 %v1059_v2, %v959_v4 }
 0x1de   : > { %v1164_v10 = vpop.f32.mrf.mxu0 }
 0x1df   : > { %v1065_v11 = vadd.f32 %v1061_v9, %v960_v6  ;;  %v1169_v12 = vadd.f32 %v1164_v10, %v1064_v7 }
 0x1e0   : > { %v1166_v13 = vpop.f32.mrf.mxu0 }
 0x1e1   : > { %v1170_v15 = vadd.f32 %v1166_v13, %v1065_v11  ;;  %v1177_v16 = vadd.f32 %v1175_v8, %v1169_v12 }
 0x1e3   : > { %v1178_v17 = vadd.f32 %v1175_v8, %v1170_v15  ;;  %v1185_v19 = vmul.f32 %v1183_v14, %v1177_v16 }
 0x1e5   : > { %v1186_v21 = vmul.f32 %v1183_v14, %v1178_v17  ;;  %v1193_v22 = vadd.f32 %v1191_v20, %v1185_v19 }
 0x1e7   : > { %v1194_v23 = vadd.f32 %v1191_v20, %v1186_v21  ;;  %v1197_v24 = vmin.f32 %v1193_v22, 0.0  ;;  %vm1195_vm15 = vcmp.gt.f32.partialorder %v1193_v22, 0.0 }
 0x1e9   : > { %v1198_v25 = vmin.f32 %v1194_v23, 0.0  ;;  %v1199_v26 = vmul.f32 1.442695, %v1197_v24  ;;  %vm1196_vm0 = vcmp.gt.f32.partialorder %v1194_v23, 0.0 }
 0x1eb   : > { %1340 = vpow2.f32 %v1199_v26  ;;  %v1201_v27 = vmul.f32 1.442695, %v1198_v25 }
 0x1ed   : > { %1342 = vpow2.f32 %v1201_v27 }
 0x1f8   : > { %v1341_v28 = vpop.eup %1340 }
 0x1f9   : > { %v1308_v29 = vadd.f32 -1.0, %v1341_v28 }
 0x1fa   : > { %v1343_v30 = vpop.eup %1342 }
 0x1fb   : > { %v1309_v31 = vadd.f32 -1.0, %v1343_v30  ;;  %v1205_v32 = vsel %vm1195_vm15, %v1193_v22, %v1308_v29 }
 0x1fc   : > { %1207 = vst [vmem:[%s251_s27] sm:$0xff] %v1205_v32 }
 0x1fd   : > { %v1206_v33 = vsel %vm1196_vm0, %v1194_v23, %v1309_v31 }
 0x1fe   : > { %1208 = vst [vmem:[%s251_s27 + $0x8] sm:$0xff] %v1206_v33 }
 0x1ff PF: > { %s16_s21 = sadd.s32 1, %s1350_s21  }
 0x200   : > { %p13_p4 = scmp.ge.s32.totalorder %s16_s21, 4  }
 0x202   :  { %15 = sbr.rel (!%p13_p4) target bundleno = 1 (0x1), region = 83 }

</bundles_post_ra>
